<compile_context>
chip_gen: v7x
topology: tpu7x:2x2x1
jax: 0.10.0
libtpu: 0.0.40
codegen_flags: <defaults>
</compile_context>

<pallas_src>
import jax
import jax.numpy as jnp
import numpy as np
from jax.experimental import pallas as pl
from jax.experimental.pallas import tpu as pltpu

EPS = 1e-6                 # RMSNorm epsilon
LANE = 128                 # TPU lane width; channel padding unit
_TARGET_MXU_ROWS = 256     # rows per dot needed to fill the MXU M dim (v6e/v7x)


def _pad_to_lanes(c):
    return ((c + LANE - 1) // LANE) * LANE


def _physical_vmem_bytes():
    """Physical VMEM of the current chip (fallback: 128 MiB as on v5e/v6e)."""
    try:
        return int(pltpu.get_tpu_info().vmem_capacity_bytes)
    except Exception:
        return 128 * 1024 * 1024


# ---------------------------------------------------------------------------
# In-kernel helpers
# ---------------------------------------------------------------------------
def _conv1d(h, w_ref, K, P, masks, use_im2col):
    """'same' conv1d over the flattened (R, Cin_p) row slab via MXU matmul(s).

    h      : (R, Cin_p) f32 activation, R = B_t * L (padded lanes exactly zero).
    w_ref  : (K*Cin_p, Cout_p) bf16, tap-major flattened weight.
    masks  : dict {shift d: (R,1) bool} — True where the shifted source row is
             inside the SAME sample ('same' zero padding at sample edges).
    returns (R, Cout_p) f32.
    """
    R, cin_p = h.shape
    taps = []
    for k in range(K):
        d = k - P                                      # out row i uses in row i+d
        if d == 0:                                     # zero shift, always valid
            taps.append(h.astype(jnp.bfloat16))
            continue
        shifted = pltpu.roll(h, (-d) % R, axis=0)      # sublane rotate (XLU slot)
        # invalid rows (sample boundaries + roll wrap-around) == conv zero-pad
        taps.append(jnp.where(masks[d], shifted, 0.0).astype(jnp.bfloat16))
    if use_im2col:
        # lane-concat to (R, K*Cin_p) and do ONE MXU dot
        xcat = jnp.concatenate(taps, axis=-1)
        return jnp.dot(xcat, w_ref[...], preferred_element_type=jnp.float32)
    # tap-wise accumulation: same MAC count, no (R, K*Cin_p) VMEM slab
    acc = None
    for k in range(K):
        part = jnp.dot(taps[k], w_ref[k * cin_p:(k + 1) * cin_p, :],
                       preferred_element_type=jnp.float32)
        acc = part if acc is None else acc + part
    return acc


def _rmsnorm(h, gain, c_real):
    """RMSNorm over channels.  Relies on padded lanes of h being exactly zero
    (zero-padded weight cols / bias / gain), so the mean divides by the REAL
    channel count."""
    ms = jnp.sum(h * h, axis=-1, keepdims=True) * (1.0 / c_real)
    return h * jax.lax.rsqrt(ms + EPS) * gain


def _make_encoder_kernel(out_channels, L, use_im2col):
    """Fused CNNEncoder kernel.  One grid step == B_t batch elements, ALL blocks
    (intermediates never leave VMEM)."""
    n_blocks = len(out_channels)

    def kernel(x_ref, pos_ref, *refs):
        o_ref = refs[-1]
        pos = pos_ref[...]                              # (R,1) int32 within-sample idx
        # Hoisted shift-validity masks, shared by every tap of every block;
        # (R,1) bool lane-broadcasts inside the selects.
        masks = {
            -2: pos >= 2,
            -1: pos >= 1,
            1: pos <= L - 2,
            2: pos <= L - 3,
        }
        h = x_ref[...].astype(jnp.float32)              # (R, C0_p), pad lanes == 0
        for b in range(n_blocks):
            w1, b1, g1, w2, g2 = refs[5 * b:5 * b + 5]
            c_real = out_channels[b]
            # conv1: kernel_size=5, padding=2, bias=True
            h = _conv1d(h, w1, 5, 2, masks, use_im2col) + b1[...]
            # RMSNorm + SiLU (f32 elementwise)
            h = _rmsnorm(h, g1[...], c_real)
            h = h * jax.nn.sigmoid(h)
            # conv2: kernel_size=3, padding=1, bias=False
            h = _conv1d(h, w2, 3, 1, masks, use_im2col)
            # RMSNorm
            h = _rmsnorm(h, g2[...], c_real)
            # TODO(synk): F.dropout(p=0.2) left as identity (eval semantics);
            # training parity would need pltpu.prng_seed + prng_random_bits.
        o_ref[...] = h.astype(o_ref.dtype)

    return kernel


# ---------------------------------------------------------------------------
# Wrapper
# ---------------------------------------------------------------------------
def _const_spec(arr):
    # Grid-invariant operand: constant index map + single-buffered (no point
    # double-buffering weights/bias/gains -> halves their VMEM footprint).
    nd = arr.ndim
    return pl.BlockSpec(arr.shape, lambda n: (0,) * nd,
                        pipeline_mode=pl.Buffered(1))


def _workset_bytes(bt, L, c0_p, c_last_p, cmax, use_im2col=True):
    """Rough per-grid-step VMEM working-set estimate."""
    R = bt * L
    io = 2 * R * c0_p * 4 + 2 * R * c_last_p * 4      # double-buffered in/out slabs
    live = 5 * R * cmax * 4                           # live f32 intermediates (slop)
    xcat = (R * 5 * cmax * 2) if use_im2col else 0    # bf16 im2col slab
    return io + live + xcat


def _pick_batch_tile(N, L, c0_p, c_last_p, cmax, budget):
    """Largest batch tile that (a) fills the MXU M dim and (b) fits the budget."""
    bt = max(1, min(N, (_TARGET_MXU_ROWS + L - 1) // L))
    while bt > 1 and _workset_bytes(bt, L, c0_p, c_last_p, cmax) > budget:
        bt -= 1
    # keep the row-block sublane aligned unless one step covers the whole batch
    while bt < N and (bt * L) % 8 != 0:
        bt += 1
    return bt


def _cnn_encoder_impl(x, params, *, channels):
    """CNNEncoder forward.  x: (N, L, channels[0]) -> (N, L, channels[-1])."""
    N, L, C0 = x.shape
    assert C0 == channels[0]
    c0_p = _pad_to_lanes(C0)
    c_last = channels[-1]
    c_last_p = params[-1][3].shape[-1]                # last block's Cout_p
    flat_params = [a for blk in params for a in blk]
    param_bytes = sum(int(np.prod(a.shape)) * a.dtype.itemsize for a in flat_params)
    cps = tuple(_pad_to_lanes(c) for c in channels[1:])
    cmax = max((c0_p,) + cps)

    # per-chip VMEM strategy: budget the tile from physical VMEM, set the
    # scoped limit from the actual need (not a hard-coded 32 MiB).
    phys = _physical_vmem_bytes()
    budget = int(phys * 0.45)

    bt = _pick_batch_tile(N, L, c0_p, c_last_p, cmax, budget)
    n_steps = (N + bt - 1) // bt
    n_pad = n_steps * bt
    R = bt * L

    # pick the conv lowering: single-dot im2col for small slabs, tap-wise
    # f32-accumulated dots when the (R, 5*Cp) bf16 slab would be too big.
    xcat_bytes = R * 5 * cmax * 2
    use_im2col = xcat_bytes <= min(8 << 20, max(budget // 6, 1))

    est = _workset_bytes(bt, L, c0_p, c_last_p, cmax, use_im2col) + param_bytes
    vmem_limit = int(min(int(phys * 0.85), max(32 << 20, 2 * est)))

    # free row-major view; HBM zero-pad only when channels/batch need padding
    x2 = x.reshape(N * L, C0)
    if (c0_p != C0) or (n_pad != N):
        x_p = jnp.zeros((n_pad * L, c0_p), x.dtype).at[:N * L, :C0].set(x2)
    else:
        x_p = x2

    # within-sample row index, identical for every grid step (grid-invariant)
    pos = jnp.tile(jnp.arange(L, dtype=jnp.int32), bt).reshape(R, 1)

    kernel = _make_encoder_kernel(tuple(channels[1:]), L, use_im2col)

    in_specs = [pl.BlockSpec((R, c0_p), lambda n: (n, 0)),
                _const_spec(pos)]
    in_specs += [_const_spec(a) for a in flat_params]

    out = pl.pallas_call(
        kernel,
        out_shape=jax.ShapeDtypeStruct((n_pad * L, c_last_p), x.dtype),
        grid=(n_steps,),
        in_specs=in_specs,
        out_specs=pl.BlockSpec((R, c_last_p), lambda n: (n, 0)),
        compiler_params=pltpu.CompilerParams(
            dimension_semantics=("parallel",),
            vmem_limit_bytes=vmem_limit,
        ),
    )(x_p, pos, *flat_params)

    out = out.reshape(n_pad, L, c_last_p)
    if n_pad != N:
        out = out[:N]
    if c_last_p != c_last:
        out = out[:, :, :c_last]
    return out


cnn_encoder = jax.jit(_cnn_encoder_impl, static_argnames=("channels",))


# ---------------------------------------------------------------------------
# Parameters (synthetic, deterministic), pre-padded / flattened / bf16
# ---------------------------------------------------------------------------
def init_cnn_encoder_params(key, channels):
    params = []
    for i in range(len(channels) - 1):
        cin, cout = channels[i], channels[i + 1]
        cin_p, cout_p = _pad_to_lanes(cin), _pad_to_lanes(cout)
        key, k1, k2, k3 = jax.random.split(key, 4)
        w1 = 0.1 * jax.random.normal(k1, (5, cin, cout), dtype=jnp.float32)
        b1 = 0.1 * jax.random.normal(k2, (cout,), dtype=jnp.float32)
        w2 = 0.1 * jax.random.normal(k3, (3, cout, cout), dtype=jnp.float32)

        # zero-pad to 128-lane multiples; pads stay exactly zero in the kernel
        w1_p = jnp.zeros((5, cin_p, cout_p), jnp.float32).at[:, :cin, :cout].set(w1)
        w2_p = jnp.zeros((3, cout_p, cout_p), jnp.float32).at[:, :cout, :cout].set(w2)
        b1_p = jnp.zeros((1, cout_p), jnp.float32).at[0, :cout].set(b1)
        g1_p = jnp.zeros((1, cout_p), jnp.float32).at[0, :cout].set(1.0)
        g2_p = jnp.zeros((1, cout_p), jnp.float32).at[0, :cout].set(1.0)

        # im2col / tap-major flattened, bf16 MXU operands: (K*Cin_p, Cout_p)
        # TODO(synk): optionally store fp8 (e4m3) on v7x if accuracy allows.
        w1_f = w1_p.reshape(5 * cin_p, cout_p).astype(jnp.bfloat16)
        w2_f = w2_p.reshape(3 * cout_p, cout_p).astype(jnp.bfloat16)
        params.append((w1_f, b1_p, g1_p, w2_f, g2_p))
    return params


# ---------------------------------------------------------------------------
# Pure-JAX reference for a sanity check.  Same bf16-STORED weights, but the
# reference keeps activations in f32 at the matmuls while the kernel casts
# them to bf16 for the MXU — hence the loose tolerance (compounds per block).
# ---------------------------------------------------------------------------
def _reference(x, params, channels):
    N, L, C0 = x.shape
    c0_p = params[0][0].shape[0] // 5
    h = jnp.zeros((N, L, c0_p), jnp.float32).at[:, :, :C0].set(x)

    def conv(h, w_flat, K, P):
        ci = h.shape[-1]
        w = w_flat.astype(jnp.float32).reshape(K, ci, -1)
        hp = jnp.pad(h, ((0, 0), (P, P), (0, 0)))
        out = jnp.zeros(h.shape[:-1] + (w.shape[-1],), jnp.float32)
        for k in range(K):
            out = out + jnp.einsum("nlc,cd->nld", hp[:, k:k + L, :], w[k])
        return out

    def rms(h, g, c_real):
        ms = jnp.sum(h * h, axis=-1, keepdims=True) / c_real
        return h * jax.lax.rsqrt(ms + EPS) * g

    for i in range(len(channels) - 1):
        w1f, b1, g1, w2f, g2 = params[i]
        c_real = channels[i + 1]
        h = conv(h, w1f, 5, 2) + b1
        h = rms(h, g1, c_real)
        h = h * jax.nn.sigmoid(h)
        h = conv(h, w2f, 3, 1)
        h = rms(h, g2, c_real)
    return h[:, :, :channels[-1]]


if __name__ == "__main__":
    key = jax.random.PRNGKey(0)
    channels = (4, 8, 16)          # freq_bins=4 -> 8 -> 16 latent dims
    N, L = 2, 16                   # batch=2, seq_len=16

    kx, kp = jax.random.split(key)
    x = jax.random.normal(kx, (N, L, channels[0]), dtype=jnp.float32)
    params = init_cnn_encoder_params(kp, channels)

    out = cnn_encoder(x, params, channels=channels)
    jax.block_until_ready(out)

    assert out.shape == (N, L, channels[-1]), out.shape
    assert bool(jnp.all(jnp.isfinite(out))), "non-finite output"

    # correctness vs. pure-JAX reference
    ref = _reference(x, params, channels)
    np.testing.assert_allclose(np.asarray(out), np.asarray(ref),
                               atol=5e-2, rtol=5e-2)

    print("KERNEL_OK")
</pallas_src>

<mosaic_0001>
module attributes {stable_mosaic.version = 11 : i64} {
  func.func @kernel(%arg0: i32, %arg1: memref<32x128xf32, #tpu.memory_space<vmem>>, %arg2: memref<32x1xi32, #tpu.memory_space<vmem>>, %arg3: memref<640x128xbf16, #tpu.memory_space<vmem>>, %arg4: memref<1x128xf32, #tpu.memory_space<vmem>>, %arg5: memref<1x128xf32, #tpu.memory_space<vmem>>, %arg6: memref<384x128xbf16, #tpu.memory_space<vmem>>, %arg7: memref<1x128xf32, #tpu.memory_space<vmem>>, %arg8: memref<640x128xbf16, #tpu.memory_space<vmem>>, %arg9: memref<1x128xf32, #tpu.memory_space<vmem>>, %arg10: memref<1x128xf32, #tpu.memory_space<vmem>>, %arg11: memref<384x128xbf16, #tpu.memory_space<vmem>>, %arg12: memref<1x128xf32, #tpu.memory_space<vmem>>, %arg13: memref<32x128xf32, #tpu.memory_space<vmem>>) attributes {dimension_semantics = [#tpu.dimension_semantics<parallel>], iteration_bounds = array<i64: 1>, scalar_prefetch = 0 : i64, scratch_operands = 0 : i64, tpu.core_type = #tpu.core_type<tc>, window_params = [{transform_indices = @transform_0, window_bounds = array<i64: 32, 128>}, {pipeline_mode = #tpu.pipeline_mode<synchronous>, transform_indices = @transform_1, window_bounds = array<i64: 32, 1>}, {pipeline_mode = #tpu.pipeline_mode<synchronous>, transform_indices = @transform_2, window_bounds = array<i64: 640, 128>}, {pipeline_mode = #tpu.pipeline_mode<synchronous>, transform_indices = @transform_3, window_bounds = array<i64: 1, 128>}, {pipeline_mode = #tpu.pipeline_mode<synchronous>, transform_indices = @transform_4, window_bounds = array<i64: 1, 128>}, {pipeline_mode = #tpu.pipeline_mode<synchronous>, transform_indices = @transform_5, window_bounds = array<i64: 384, 128>}, {pipeline_mode = #tpu.pipeline_mode<synchronous>, transform_indices = @transform_6, window_bounds = array<i64: 1, 128>}, {pipeline_mode = #tpu.pipeline_mode<synchronous>, transform_indices = @transform_7, window_bounds = array<i64: 640, 128>}, {pipeline_mode = #tpu.pipeline_mode<synchronous>, transform_indices = @transform_8, window_bounds = array<i64: 1, 128>}, {pipeline_mode = #tpu.pipeline_mode<synchronous>, transform_indices = @transform_9, window_bounds = array<i64: 1, 128>}, {pipeline_mode = #tpu.pipeline_mode<synchronous>, transform_indices = @transform_10, window_bounds = array<i64: 384, 128>}, {pipeline_mode = #tpu.pipeline_mode<synchronous>, transform_indices = @transform_11, window_bounds = array<i64: 1, 128>}, {transform_indices = @transform_12, window_bounds = array<i64: 32, 128>}]} {
    %c0 = arith.constant 0 : index
    %c0_0 = arith.constant 0 : index
    %0 = vector.load %arg2[%c0, %c0_0] : memref<32x1xi32, #tpu.memory_space<vmem>>, vector<32x1xi32>
    %c2_i32 = arith.constant 2 : i32
    %1 = vector.broadcast %c2_i32 : i32 to vector<32x1xi32>
    %2 = arith.cmpi sge, %0, %1 : vector<32x1xi32>
    %c1_i32 = arith.constant 1 : i32
    %3 = vector.broadcast %c1_i32 : i32 to vector<32x1xi32>
    %4 = arith.cmpi sge, %0, %3 : vector<32x1xi32>
    %c14_i32 = arith.constant 14 : i32
    %5 = vector.broadcast %c14_i32 : i32 to vector<32x1xi32>
    %6 = arith.cmpi sle, %0, %5 : vector<32x1xi32>
    %c13_i32 = arith.constant 13 : i32
    %7 = vector.broadcast %c13_i32 : i32 to vector<32x1xi32>
    %8 = arith.cmpi sle, %0, %7 : vector<32x1xi32>
    %c0_1 = arith.constant 0 : index
    %c0_2 = arith.constant 0 : index
    %9 = vector.load %arg1[%c0_1, %c0_2] : memref<32x128xf32, #tpu.memory_space<vmem>>, vector<32x128xf32>
    %c2_i32_3 = arith.constant 2 : i32
    %10 = tpu.dynamic_rotate %9 by %c2_i32_3 dim 0 : vector<32x128xf32>, i32 -> vector<32x128xf32>
    %cst = arith.constant 0.000000e+00 : f32
    %11 = vector.shape_cast %2 : vector<32x1xi1> to vector<32x1xi1>
    %12 = vector.broadcast %11 : vector<32x1xi1> to vector<32x128xi1>
    %13 = vector.broadcast %cst : f32 to vector<32x128xf32>
    %14 = arith.select %12, %10, %13 : vector<32x128xi1>, vector<32x128xf32>
    %15 = arith.truncf %14 : vector<32x128xf32> to vector<32x128xbf16>
    %c1_i32_4 = arith.constant 1 : i32
    %16 = tpu.dynamic_rotate %9 by %c1_i32_4 dim 0 : vector<32x128xf32>, i32 -> vector<32x128xf32>
    %cst_5 = arith.constant 0.000000e+00 : f32
    %17 = vector.shape_cast %4 : vector<32x1xi1> to vector<32x1xi1>
    %18 = vector.broadcast %17 : vector<32x1xi1> to vector<32x128xi1>
    %19 = vector.broadcast %cst_5 : f32 to vector<32x128xf32>
    %20 = arith.select %18, %16, %19 : vector<32x128xi1>, vector<32x128xf32>
    %21 = arith.truncf %20 : vector<32x128xf32> to vector<32x128xbf16>
    %22 = arith.truncf %9 : vector<32x128xf32> to vector<32x128xbf16>
    %c31_i32 = arith.constant 31 : i32
    %23 = tpu.dynamic_rotate %9 by %c31_i32 dim 0 : vector<32x128xf32>, i32 -> vector<32x128xf32>
    %cst_6 = arith.constant 0.000000e+00 : f32
    %24 = vector.shape_cast %6 : vector<32x1xi1> to vector<32x1xi1>
    %25 = vector.broadcast %24 : vector<32x1xi1> to vector<32x128xi1>
    %26 = vector.broadcast %cst_6 : f32 to vector<32x128xf32>
    %27 = arith.select %25, %23, %26 : vector<32x128xi1>, vector<32x128xf32>
    %28 = arith.truncf %27 : vector<32x128xf32> to vector<32x128xbf16>
    %c30_i32 = arith.constant 30 : i32
    %29 = tpu.dynamic_rotate %9 by %c30_i32 dim 0 : vector<32x128xf32>, i32 -> vector<32x128xf32>
    %cst_7 = arith.constant 0.000000e+00 : f32
    %30 = vector.shape_cast %8 : vector<32x1xi1> to vector<32x1xi1>
    %31 = vector.broadcast %30 : vector<32x1xi1> to vector<32x128xi1>
    %32 = vector.broadcast %cst_7 : f32 to vector<32x128xf32>
    %33 = arith.select %31, %29, %32 : vector<32x128xi1>, vector<32x128xf32>
    %34 = arith.truncf %33 : vector<32x128xf32> to vector<32x128xbf16>
    %35 = tpu.concatenate %15, %21, %22, %28, %34 in 1 : vector<32x128xbf16>, vector<32x128xbf16>, vector<32x128xbf16>, vector<32x128xbf16>, vector<32x128xbf16> -> vector<32x640xbf16>
    %c0_8 = arith.constant 0 : index
    %c0_9 = arith.constant 0 : index
    %36 = vector.load %arg3[%c0_8, %c0_9] : memref<640x128xbf16, #tpu.memory_space<vmem>>, vector<640x128xbf16>
    %cst_10 = arith.constant dense<0.000000e+00> : vector<32x128xf32>
    %37 = tpu.matmul %35, %36, %cst_10 {dimension_numbers = #tpu.dot_dimension_numbers<[1], [0], [0], [1], [0, 0, 1, 1], [], []>} : vector<32x640xbf16>, vector<640x128xbf16>, vector<32x128xf32> -> vector<32x128xf32>
    %c0_11 = arith.constant 0 : index
    %c0_12 = arith.constant 0 : index
    %38 = vector.load %arg4[%c0_11, %c0_12] : memref<1x128xf32, #tpu.memory_space<vmem>>, vector<1x128xf32>
    %39 = vector.broadcast %38 : vector<1x128xf32> to vector<32x128xf32>
    %40 = arith.addf %37, %39 : vector<32x128xf32>
    %c0_13 = arith.constant 0 : index
    %c0_14 = arith.constant 0 : index
    %41 = vector.load %arg5[%c0_13, %c0_14] : memref<1x128xf32, #tpu.memory_space<vmem>>, vector<1x128xf32>
    %42 = arith.mulf %40, %40 : vector<32x128xf32>
    %cst_15 = arith.constant dense<0.000000e+00> : vector<32xf32>
    %43 = vector.multi_reduction <add>, %42, %cst_15 [1] : vector<32x128xf32> to vector<32xf32>
    %44 = vector.shape_cast %43 : vector<32xf32> to vector<32x1xf32>
    %cst_16 = arith.constant 1.250000e-01 : f32
    %45 = vector.broadcast %cst_16 : f32 to vector<32x1xf32>
    %46 = arith.mulf %44, %45 : vector<32x1xf32>
    %cst_17 = arith.constant 9.99999997E-7 : f32
    %47 = vector.broadcast %cst_17 : f32 to vector<32x1xf32>
    %48 = arith.addf %46, %47 : vector<32x1xf32>
    %49 = math.rsqrt %48 : vector<32x1xf32>
    %50 = vector.broadcast %49 : vector<32x1xf32> to vector<32x128xf32>
    %51 = arith.mulf %40, %50 : vector<32x128xf32>
    %52 = vector.broadcast %41 : vector<1x128xf32> to vector<32x128xf32>
    %53 = arith.mulf %51, %52 : vector<32x128xf32>
    %54 = arith.negf %53 : vector<32x128xf32>
    %55 = math.exp %54 : vector<32x128xf32>
    %cst_18 = arith.constant 1.000000e+00 : f32
    %56 = vector.broadcast %cst_18 : f32 to vector<32x128xf32>
    %57 = arith.addf %56, %55 : vector<32x128xf32>
    %58 = arith.divf %56, %57 : vector<32x128xf32>
    %59 = arith.mulf %53, %58 : vector<32x128xf32>
    %c1_i32_19 = arith.constant 1 : i32
    %60 = tpu.dynamic_rotate %59 by %c1_i32_19 dim 0 : vector<32x128xf32>, i32 -> vector<32x128xf32>
    %cst_20 = arith.constant 0.000000e+00 : f32
    %61 = vector.shape_cast %4 : vector<32x1xi1> to vector<32x1xi1>
    %62 = vector.broadcast %61 : vector<32x1xi1> to vector<32x128xi1>
    %63 = vector.broadcast %cst_20 : f32 to vector<32x128xf32>
    %64 = arith.select %62, %60, %63 : vector<32x128xi1>, vector<32x128xf32>
    %65 = arith.truncf %64 : vector<32x128xf32> to vector<32x128xbf16>
    %66 = arith.truncf %59 : vector<32x128xf32> to vector<32x128xbf16>
    %c31_i32_21 = arith.constant 31 : i32
    %67 = tpu.dynamic_rotate %59 by %c31_i32_21 dim 0 : vector<32x128xf32>, i32 -> vector<32x128xf32>
    %cst_22 = arith.constant 0.000000e+00 : f32
    %68 = vector.shape_cast %6 : vector<32x1xi1> to vector<32x1xi1>
    %69 = vector.broadcast %68 : vector<32x1xi1> to vector<32x128xi1>
    %70 = vector.broadcast %cst_22 : f32 to vector<32x128xf32>
    %71 = arith.select %69, %67, %70 : vector<32x128xi1>, vector<32x128xf32>
    %72 = arith.truncf %71 : vector<32x128xf32> to vector<32x128xbf16>
    %73 = tpu.concatenate %65, %66, %72 in 1 : vector<32x128xbf16>, vector<32x128xbf16>, vector<32x128xbf16> -> vector<32x384xbf16>
    %c0_23 = arith.constant 0 : index
    %c0_24 = arith.constant 0 : index
    %74 = vector.load %arg6[%c0_23, %c0_24] : memref<384x128xbf16, #tpu.memory_space<vmem>>, vector<384x128xbf16>
    %cst_25 = arith.constant dense<0.000000e+00> : vector<32x128xf32>
    %75 = tpu.matmul %73, %74, %cst_25 {dimension_numbers = #tpu.dot_dimension_numbers<[1], [0], [0], [1], [0, 0, 1, 1], [], []>} : vector<32x384xbf16>, vector<384x128xbf16>, vector<32x128xf32> -> vector<32x128xf32>
    %c0_26 = arith.constant 0 : index
    %c0_27 = arith.constant 0 : index
    %76 = vector.load %arg7[%c0_26, %c0_27] : memref<1x128xf32, #tpu.memory_space<vmem>>, vector<1x128xf32>
    %77 = arith.mulf %75, %75 : vector<32x128xf32>
    %cst_28 = arith.constant dense<0.000000e+00> : vector<32xf32>
    %78 = vector.multi_reduction <add>, %77, %cst_28 [1] : vector<32x128xf32> to vector<32xf32>
    %79 = vector.shape_cast %78 : vector<32xf32> to vector<32x1xf32>
    %cst_29 = arith.constant 1.250000e-01 : f32
    %80 = vector.broadcast %cst_29 : f32 to vector<32x1xf32>
    %81 = arith.mulf %79, %80 : vector<32x1xf32>
    %cst_30 = arith.constant 9.99999997E-7 : f32
    %82 = vector.broadcast %cst_30 : f32 to vector<32x1xf32>
    %83 = arith.addf %81, %82 : vector<32x1xf32>
    %84 = math.rsqrt %83 : vector<32x1xf32>
    %85 = vector.broadcast %84 : vector<32x1xf32> to vector<32x128xf32>
    %86 = arith.mulf %75, %85 : vector<32x128xf32>
    %87 = vector.broadcast %76 : vector<1x128xf32> to vector<32x128xf32>
    %88 = arith.mulf %86, %87 : vector<32x128xf32>
    %c2_i32_31 = arith.constant 2 : i32
    %89 = tpu.dynamic_rotate %88 by %c2_i32_31 dim 0 : vector<32x128xf32>, i32 -> vector<32x128xf32>
    %cst_32 = arith.constant 0.000000e+00 : f32
    %90 = vector.shape_cast %2 : vector<32x1xi1> to vector<32x1xi1>
    %91 = vector.broadcast %90 : vector<32x1xi1> to vector<32x128xi1>
    %92 = vector.broadcast %cst_32 : f32 to vector<32x128xf32>
    %93 = arith.select %91, %89, %92 : vector<32x128xi1>, vector<32x128xf32>
    %94 = arith.truncf %93 : vector<32x128xf32> to vector<32x128xbf16>
    %c1_i32_33 = arith.constant 1 : i32
    %95 = tpu.dynamic_rotate %88 by %c1_i32_33 dim 0 : vector<32x128xf32>, i32 -> vector<32x128xf32>
    %cst_34 = arith.constant 0.000000e+00 : f32
    %96 = vector.shape_cast %4 : vector<32x1xi1> to vector<32x1xi1>
    %97 = vector.broadcast %96 : vector<32x1xi1> to vector<32x128xi1>
    %98 = vector.broadcast %cst_34 : f32 to vector<32x128xf32>
    %99 = arith.select %97, %95, %98 : vector<32x128xi1>, vector<32x128xf32>
    %100 = arith.truncf %99 : vector<32x128xf32> to vector<32x128xbf16>
    %101 = arith.truncf %88 : vector<32x128xf32> to vector<32x128xbf16>
    %c31_i32_35 = arith.constant 31 : i32
    %102 = tpu.dynamic_rotate %88 by %c31_i32_35 dim 0 : vector<32x128xf32>, i32 -> vector<32x128xf32>
    %cst_36 = arith.constant 0.000000e+00 : f32
    %103 = vector.shape_cast %6 : vector<32x1xi1> to vector<32x1xi1>
    %104 = vector.broadcast %103 : vector<32x1xi1> to vector<32x128xi1>
    %105 = vector.broadcast %cst_36 : f32 to vector<32x128xf32>
    %106 = arith.select %104, %102, %105 : vector<32x128xi1>, vector<32x128xf32>
    %107 = arith.truncf %106 : vector<32x128xf32> to vector<32x128xbf16>
    %c30_i32_37 = arith.constant 30 : i32
    %108 = tpu.dynamic_rotate %88 by %c30_i32_37 dim 0 : vector<32x128xf32>, i32 -> vector<32x128xf32>
    %cst_38 = arith.constant 0.000000e+00 : f32
    %109 = vector.shape_cast %8 : vector<32x1xi1> to vector<32x1xi1>
    %110 = vector.broadcast %109 : vector<32x1xi1> to vector<32x128xi1>
    %111 = vector.broadcast %cst_38 : f32 to vector<32x128xf32>
    %112 = arith.select %110, %108, %111 : vector<32x128xi1>, vector<32x128xf32>
    %113 = arith.truncf %112 : vector<32x128xf32> to vector<32x128xbf16>
    %114 = tpu.concatenate %94, %100, %101, %107, %113 in 1 : vector<32x128xbf16>, vector<32x128xbf16>, vector<32x128xbf16>, vector<32x128xbf16>, vector<32x128xbf16> -> vector<32x640xbf16>
    %c0_39 = arith.constant 0 : index
    %c0_40 = arith.constant 0 : index
    %115 = vector.load %arg8[%c0_39, %c0_40] : memref<640x128xbf16, #tpu.memory_space<vmem>>, vector<640x128xbf16>
    %cst_41 = arith.constant dense<0.000000e+00> : vector<32x128xf32>
    %116 = tpu.matmul %114, %115, %cst_41 {dimension_numbers = #tpu.dot_dimension_numbers<[1], [0], [0], [1], [0, 0, 1, 1], [], []>} : vector<32x640xbf16>, vector<640x128xbf16>, vector<32x128xf32> -> vector<32x128xf32>
    %c0_42 = arith.constant 0 : index
    %c0_43 = arith.constant 0 : index
    %117 = vector.load %arg9[%c0_42, %c0_43] : memref<1x128xf32, #tpu.memory_space<vmem>>, vector<1x128xf32>
    %118 = vector.broadcast %117 : vector<1x128xf32> to vector<32x128xf32>
    %119 = arith.addf %116, %118 : vector<32x128xf32>
    %c0_44 = arith.constant 0 : index
    %c0_45 = arith.constant 0 : index
    %120 = vector.load %arg10[%c0_44, %c0_45] : memref<1x128xf32, #tpu.memory_space<vmem>>, vector<1x128xf32>
    %121 = arith.mulf %119, %119 : vector<32x128xf32>
    %cst_46 = arith.constant dense<0.000000e+00> : vector<32xf32>
    %122 = vector.multi_reduction <add>, %121, %cst_46 [1] : vector<32x128xf32> to vector<32xf32>
    %123 = vector.shape_cast %122 : vector<32xf32> to vector<32x1xf32>
    %cst_47 = arith.constant 6.250000e-02 : f32
    %124 = vector.broadcast %cst_47 : f32 to vector<32x1xf32>
    %125 = arith.mulf %123, %124 : vector<32x1xf32>
    %cst_48 = arith.constant 9.99999997E-7 : f32
    %126 = vector.broadcast %cst_48 : f32 to vector<32x1xf32>
    %127 = arith.addf %125, %126 : vector<32x1xf32>
    %128 = math.rsqrt %127 : vector<32x1xf32>
    %129 = vector.broadcast %128 : vector<32x1xf32> to vector<32x128xf32>
    %130 = arith.mulf %119, %129 : vector<32x128xf32>
    %131 = vector.broadcast %120 : vector<1x128xf32> to vector<32x128xf32>
    %132 = arith.mulf %130, %131 : vector<32x128xf32>
    %133 = arith.negf %132 : vector<32x128xf32>
    %134 = math.exp %133 : vector<32x128xf32>
    %cst_49 = arith.constant 1.000000e+00 : f32
    %135 = vector.broadcast %cst_49 : f32 to vector<32x128xf32>
    %136 = arith.addf %135, %134 : vector<32x128xf32>
    %137 = arith.divf %135, %136 : vector<32x128xf32>
    %138 = arith.mulf %132, %137 : vector<32x128xf32>
    %c1_i32_50 = arith.constant 1 : i32
    %139 = tpu.dynamic_rotate %138 by %c1_i32_50 dim 0 : vector<32x128xf32>, i32 -> vector<32x128xf32>
    %cst_51 = arith.constant 0.000000e+00 : f32
    %140 = vector.shape_cast %4 : vector<32x1xi1> to vector<32x1xi1>
    %141 = vector.broadcast %140 : vector<32x1xi1> to vector<32x128xi1>
    %142 = vector.broadcast %cst_51 : f32 to vector<32x128xf32>
    %143 = arith.select %141, %139, %142 : vector<32x128xi1>, vector<32x128xf32>
    %144 = arith.truncf %143 : vector<32x128xf32> to vector<32x128xbf16>
    %145 = arith.truncf %138 : vector<32x128xf32> to vector<32x128xbf16>
    %c31_i32_52 = arith.constant 31 : i32
    %146 = tpu.dynamic_rotate %138 by %c31_i32_52 dim 0 : vector<32x128xf32>, i32 -> vector<32x128xf32>
    %cst_53 = arith.constant 0.000000e+00 : f32
    %147 = vector.shape_cast %6 : vector<32x1xi1> to vector<32x1xi1>
    %148 = vector.broadcast %147 : vector<32x1xi1> to vector<32x128xi1>
    %149 = vector.broadcast %cst_53 : f32 to vector<32x128xf32>
    %150 = arith.select %148, %146, %149 : vector<32x128xi1>, vector<32x128xf32>
    %151 = arith.truncf %150 : vector<32x128xf32> to vector<32x128xbf16>
    %152 = tpu.concatenate %144, %145, %151 in 1 : vector<32x128xbf16>, vector<32x128xbf16>, vector<32x128xbf16> -> vector<32x384xbf16>
    %c0_54 = arith.constant 0 : index
    %c0_55 = arith.constant 0 : index
    %153 = vector.load %arg11[%c0_54, %c0_55] : memref<384x128xbf16, #tpu.memory_space<vmem>>, vector<384x128xbf16>
    %cst_56 = arith.constant dense<0.000000e+00> : vector<32x128xf32>
    %154 = tpu.matmul %152, %153, %cst_56 {dimension_numbers = #tpu.dot_dimension_numbers<[1], [0], [0], [1], [0, 0, 1, 1], [], []>} : vector<32x384xbf16>, vector<384x128xbf16>, vector<32x128xf32> -> vector<32x128xf32>
    %c0_57 = arith.constant 0 : index
    %c0_58 = arith.constant 0 : index
    %155 = vector.load %arg12[%c0_57, %c0_58] : memref<1x128xf32, #tpu.memory_space<vmem>>, vector<1x128xf32>
    %156 = arith.mulf %154, %154 : vector<32x128xf32>
    %cst_59 = arith.constant dense<0.000000e+00> : vector<32xf32>
    %157 = vector.multi_reduction <add>, %156, %cst_59 [1] : vector<32x128xf32> to vector<32xf32>
    %158 = vector.shape_cast %157 : vector<32xf32> to vector<32x1xf32>
    %cst_60 = arith.constant 6.250000e-02 : f32
    %159 = vector.broadcast %cst_60 : f32 to vector<32x1xf32>
    %160 = arith.mulf %158, %159 : vector<32x1xf32>
    %cst_61 = arith.constant 9.99999997E-7 : f32
    %161 = vector.broadcast %cst_61 : f32 to vector<32x1xf32>
    %162 = arith.addf %160, %161 : vector<32x1xf32>
    %163 = math.rsqrt %162 : vector<32x1xf32>
    %164 = vector.broadcast %163 : vector<32x1xf32> to vector<32x128xf32>
    %165 = arith.mulf %154, %164 : vector<32x128xf32>
    %166 = vector.broadcast %155 : vector<1x128xf32> to vector<32x128xf32>
    %167 = arith.mulf %165, %166 : vector<32x128xf32>
    %c0_62 = arith.constant 0 : index
    %c0_63 = arith.constant 0 : index
    %168 = vector.load %arg13[%c0_62, %c0_63] : memref<32x128xf32, #tpu.memory_space<vmem>>, vector<32x128xf32>
    tpu.vector_store %arg13[%c0_62, %c0_63], %167 {strides = array<i32>} : memref<32x128xf32, #tpu.memory_space<vmem>>, vector<32x128xf32>,
    return
  }
  func.func @transform_0(%arg0: i32) -> (i32, i32) {
    %c0_i32 = arith.constant 0 : i32
    %c0_i32_0 = arith.constant 0 : i32
    return %arg0, %c0_i32 : i32, i32
  }
  func.func @transform_1(%arg0: i32) -> (i32, i32) {
    %c0_i32 = arith.constant 0 : i32
    %c0_i32_0 = arith.constant 0 : i32
    %c0_i32_1 = arith.constant 0 : i32
    return %c0_i32, %c0_i32_0 : i32, i32
  }
  func.func @transform_2(%arg0: i32) -> (i32, i32) {
    %c0_i32 = arith.constant 0 : i32
    %c0_i32_0 = arith.constant 0 : i32
    %c0_i32_1 = arith.constant 0 : i32
    return %c0_i32, %c0_i32_0 : i32, i32
  }
  func.func @transform_3(%arg0: i32) -> (i32, i32) {
    %c0_i32 = arith.constant 0 : i32
    %c0_i32_0 = arith.constant 0 : i32
    %c0_i32_1 = arith.constant 0 : i32
    return %c0_i32, %c0_i32_0 : i32, i32
  }
  func.func @transform_4(%arg0: i32) -> (i32, i32) {
    %c0_i32 = arith.constant 0 : i32
    %c0_i32_0 = arith.constant 0 : i32
    %c0_i32_1 = arith.constant 0 : i32
    return %c0_i32, %c0_i32_0 : i32, i32
  }
  func.func @transform_5(%arg0: i32) -> (i32, i32) {
    %c0_i32 = arith.constant 0 : i32
    %c0_i32_0 = arith.constant 0 : i32
    %c0_i32_1 = arith.constant 0 : i32
    return %c0_i32, %c0_i32_0 : i32, i32
  }
  func.func @transform_6(%arg0: i32) -> (i32, i32) {
    %c0_i32 = arith.constant 0 : i32
    %c0_i32_0 = arith.constant 0 : i32
    %c0_i32_1 = arith.constant 0 : i32
    return %c0_i32, %c0_i32_0 : i32, i32
  }
  func.func @transform_7(%arg0: i32) -> (i32, i32) {
    %c0_i32 = arith.constant 0 : i32
    %c0_i32_0 = arith.constant 0 : i32
    %c0_i32_1 = arith.constant 0 : i32
    return %c0_i32, %c0_i32_0 : i32, i32
  }
  func.func @transform_8(%arg0: i32) -> (i32, i32) {
    %c0_i32 = arith.constant 0 : i32
    %c0_i32_0 = arith.constant 0 : i32
    %c0_i32_1 = arith.constant 0 : i32
    return %c0_i32, %c0_i32_0 : i32, i32
  }
  func.func @transform_9(%arg0: i32) -> (i32, i32) {
    %c0_i32 = arith.constant 0 : i32
    %c0_i32_0 = arith.constant 0 : i32
    %c0_i32_1 = arith.constant 0 : i32
    return %c0_i32, %c0_i32_0 : i32, i32
  }
  func.func @transform_10(%arg0: i32) -> (i32, i32) {
    %c0_i32 = arith.constant 0 : i32
    %c0_i32_0 = arith.constant 0 : i32
    %c0_i32_1 = arith.constant 0 : i32
    return %c0_i32, %c0_i32_0 : i32, i32
  }
  func.func @transform_11(%arg0: i32) -> (i32, i32) {
    %c0_i32 = arith.constant 0 : i32
    %c0_i32_0 = arith.constant 0 : i32
    %c0_i32_1 = arith.constant 0 : i32
    return %c0_i32, %c0_i32_0 : i32, i32
  }
  func.func @transform_12(%arg0: i32) -> (i32, i32) {
    %c0_i32 = arith.constant 0 : i32
    %c0_i32_0 = arith.constant 0 : i32
    return %arg0, %c0_i32 : i32, i32
  }
}

</mosaic_0001>

<bundles_post_ra>
// kernel: tile.0
= control target key start
LH: loop header
LB: loop body
LE: loop exit
PB: predicated region body
PF: predicated region fallthrough
CT: control target
= control target key end

     0   :  { %s130_s8 = smov 125   ;;  %s131_s9 = smov 126   ;;  %vm7_vm0 = vcmask 7168   ;;  %s221_s0 = inlined_call_operand.vmem [shape: s32[2,16], index: 0, kind: input, shape index: {}]   ;;  %s222_s1 = inlined_call_operand.vmem [shape: s32[32,1], index: 1, kind: output, shape index: {}]  }
   0x1   :  { %v4_v0 = vld [vmem:[%s221_s0] sm:$0x3]  ;;  %s129_s0 = smov 127   ;;  %s132_s10 = smov 124  }
   0x2   :  { %5 = vst [vmem:[#allocation0] sm:$0x3] %v4_v0  ;;  %s133_s11 = smov 123   ;;  %s134_s12 = smov 122  }
   0x3   :  { %s135_s13 = smov 121   ;;  %s136_s14 = smov 120  }
   0x4   :  { %s137_s17 = smov 119   ;;  %s138_s18 = smov 118  }
   0x5   :  { %s139_s19 = smov 117   ;;  %s140_s20 = smov 116  }
   0x6   :  { %s141_s21 = smov 115   ;;  %s142_s22 = smov 114  }
   0x7   :  { %s143_s23 = smov 113  }
   0x9   :  { %v9_v1 = vld [vmem:[#allocation0] sm:$0x3]  }
   0xa   :  { %v21_v2 = vld [vmem:[#allocation0] sm:$0x3]   ;;  %10 = vrot.lane.b32.xlu0 %v9_v1, %s129_s0 }
   0xb   :  { %22 = vrot.lane.b32.xlu1 %v21_v2, %s130_s8  ;;  %v15_v3 = vld [vmem:[#allocation0] sm:$0x3]  }
   0xc   :  { %v27_v4 = vld [vmem:[#allocation0] sm:$0x3]  }
   0xd   :  { %v33_v5 = vld [vmem:[#allocation0] sm:$0x3]  }
   0xe   :  { %16 = vrot.lane.b32.xlu0 %v15_v3, %s131_s9  ;;  %v39_v6 = vld [vmem:[#allocation0] sm:$0x3]  }
   0xf   :  { %28 = vrot.lane.b32.xlu1 %v27_v4, %s132_s10  ;;  %v45_v7 = vld [vmem:[#allocation0] sm:$0x3]  }
  0x10   :  { %v51_v8 = vld [vmem:[#allocation0] sm:$0x3]  }
  0x11   :  { %v57_v9 = vld [vmem:[#allocation0] sm:$0x3]  }
  0x12   :  { %34 = vrot.lane.b32.xlu0 %v33_v5, %s133_s11  ;;  %v63_v10 = vld [vmem:[#allocation0] sm:$0x3]  }
  0x13   :  { %40 = vrot.lane.b32.xlu1 %v39_v6, %s134_s12  ;;  %v6_v11 = vld [vmem:[#allocation0] sm:$0x3]  }
  0x14   :  { %8 = vst.msk [vmem:[%s222_s1] ss:$16 sm:$0x3] %vm7_vm0, %v6_v11   ;;  %v69_v12 = vld [vmem:[#allocation0] sm:$0x3]  }
  0x15   :  { %v75_v13 = vld [vmem:[#allocation0] sm:$0x3]  }
  0x16   :  { %46 = vrot.lane.b32.xlu0 %v45_v7, %s135_s13  ;;  %v81_v14 = vld [vmem:[#allocation0] sm:$0x3]  }
  0x17   :  { %52 = vrot.lane.b32.xlu1 %v51_v8, %s136_s14  ;;  %v87_v15 = vld [vmem:[#allocation0] sm:$0x3]  }
  0x18   :  { %v93_v16 = vld [vmem:[#allocation0] sm:$0x3]  }
  0x1a   :  { %58 = vrot.lane.b32.xlu0 %v57_v9, %s137_s17 }
  0x1b   :  { %64 = vrot.lane.b32.xlu1 %v63_v10, %s138_s18 }
  0x1e   :  { %70 = vrot.lane.b32.xlu0 %v69_v12, %s139_s19 }
  0x1f   :  { %76 = vrot.lane.b32.xlu1 %v75_v13, %s140_s20 }
  0x22   :  { %82 = vrot.lane.b32.xlu0 %v81_v14, %s141_s21 }
  0x23   :  { %88 = vrot.lane.b32.xlu1 %v87_v15, %s142_s22 }
  0x26   :  { %94 = vrot.lane.b32.xlu0 %v93_v16, %s143_s23 }
  0x7c   :  { %v11_v17 = vpop.permute.xlu0 %10  }
  0x7d   :  { %v23_v18 = vpop.permute.xlu1 %22   ;;  %99 = vst.msk [vmem:[%s222_s1 + $0x1] ss:$16 sm:$0x3] %vm7_vm0, %v11_v17  }
  0x7e   :  { %101 = vst.msk [vmem:[%s222_s1 + $0x3] ss:$16 sm:$0x3] %vm7_vm0, %v23_v18  }
  0x80   :  { %v17_v19 = vpop.permute.xlu0 %16  }
  0x81   :  { %v29_v20 = vpop.permute.xlu1 %28   ;;  %100 = vst.msk [vmem:[%s222_s1 + $0x2] ss:$16 sm:$0x3] %vm7_vm0, %v17_v19  }
  0x82   :  { %102 = vst.msk [vmem:[%s222_s1 + $0x4] ss:$16 sm:$0x3] %vm7_vm0, %v29_v20  }
  0x84   :  { %v35_v21 = vpop.permute.xlu0 %34  }
  0x85   :  { %v41_v22 = vpop.permute.xlu1 %40   ;;  %103 = vst.msk [vmem:[%s222_s1 + $0x5] ss:$16 sm:$0x3] %vm7_vm0, %v35_v21  }
  0x86   :  { %104 = vst.msk [vmem:[%s222_s1 + $0x6] ss:$16 sm:$0x3] %vm7_vm0, %v41_v22  }
  0x88   :  { %v47_v23 = vpop.permute.xlu0 %46  }
  0x89   :  { %v53_v24 = vpop.permute.xlu1 %52   ;;  %105 = vst.msk [vmem:[%s222_s1 + $0x7] ss:$16 sm:$0x3] %vm7_vm0, %v47_v23  }
  0x8a   :  { %106 = vst.msk [vmem:[%s222_s1 + $0x8] ss:$16 sm:$0x3] %vm7_vm0, %v53_v24  }
  0x8c   :  { %v59_v25 = vpop.permute.xlu0 %58  }
  0x8d   :  { %v65_v26 = vpop.permute.xlu1 %64   ;;  %107 = vst.msk [vmem:[%s222_s1 + $0x9] ss:$16 sm:$0x3] %vm7_vm0, %v59_v25  }
  0x8e   :  { %108 = vst.msk [vmem:[%s222_s1 + $0xa] ss:$16 sm:$0x3] %vm7_vm0, %v65_v26  }
  0x90   :  { %v71_v27 = vpop.permute.xlu0 %70  }
  0x91   :  { %v77_v28 = vpop.permute.xlu1 %76   ;;  %109 = vst.msk [vmem:[%s222_s1 + $0xb] ss:$16 sm:$0x3] %vm7_vm0, %v71_v27  }
  0x92   :  { %110 = vst.msk [vmem:[%s222_s1 + $0xc] ss:$16 sm:$0x3] %vm7_vm0, %v77_v28  }
  0x94   :  { %v83_v29 = vpop.permute.xlu0 %82  }
  0x95   :  { %v89_v30 = vpop.permute.xlu1 %88   ;;  %111 = vst.msk [vmem:[%s222_s1 + $0xd] ss:$16 sm:$0x3] %vm7_vm0, %v83_v29  }
  0x96   :  { %112 = vst.msk [vmem:[%s222_s1 + $0xe] ss:$16 sm:$0x3] %vm7_vm0, %v89_v30  }
  0x98   :  { %v95_v31 = vpop.permute.xlu0 %94  }
  0x99   :  { %113 = vst.msk [vmem:[%s222_s1 + $0xf] ss:$16 sm:$0x3] %vm7_vm0, %v95_v31  }

// kernel: _cnn_encoder_impl.1
= control target key start
LH: loop header
LB: loop body
LE: loop exit
PB: predicated region body
PF: predicated region fallthrough
CT: control target
= control target key end

     0   :  { %17 = vsyncpa [#allocation3], 0  ;;  %s3526_s0 = inlined_call_operand.vmem [shape: f32[32,128], index: 0, kind: input, shape index: {}]   ;;  %s3527_s1 = inlined_call_operand.vmem [shape: s32[32,1], index: 1, kind: input, shape index: {}]   ;;  %s3528_s2 = inlined_call_operand.hbm [shape: bf16[640,128], index: 2, kind: input, shape index: {}]   ;;  %s3529_s3 = inlined_call_operand.vmem [shape: f32[1,128], index: 3, kind: input, shape index: {}]   ;;  %s3530_s4 = inlined_call_operand.vmem [shape: f32[1,128], index: 4, kind: input, shape index: {}]   ;;  %s3531_s5 = inlined_call_operand.hbm [shape: bf16[384,128], index: 5, kind: input, shape index: {}]   ;;  %s3532_s6 = inlined_call_operand.vmem [shape: f32[1,128], index: 6, kind: input, shape index: {}]   ;;  %s3533_s7 = inlined_call_operand.hbm [shape: bf16[640,128], index: 7, kind: input, shape index: {}]   ;;  %s3534_s8 = inlined_call_operand.vmem [shape: f32[1,128], index: 8, kind: input, shape index: {}]   ;;  %s3535_s9 = inlined_call_operand.vmem [shape: f32[1,128], index: 9, kind: input, shape index: {}]   ;;  %s3536_s10 = inlined_call_operand.vmem [shape: bf16[384,128], index: 10, kind: input, shape index: {}]   ;;  %s3537_s11 = inlined_call_operand.vmem [shape: f32[1,128], index: 11, kind: input, shape index: {}]   ;;  %s3538_s12 = inlined_call_operand.hbm [shape: f32[32,128], index: 12, kind: output, shape index: {}]  }
   0x1   :  { %18 = vsyncpa [#allocation6], 0 }
   0x2   :  { %19 = vsyncpa [#allocation4], 0  ;;  %s2931_s21 = smov [#allocation5]   ;;  %s2932_s23 = smov [#allocation2]  }
   0x3   :  { %s45_s22 = sshll.u32 %s2931_s21, 4  ;;  %s29_s24 = sshll.u32 %s2932_s23, 4  ;;  %s46_s22 = int_to_ptr.vmem [resolvable:$true] %s45_s22  ;;  %s3005_s24 = int_to_ptr.vmem [resolvable:$true] %s29_s24 }
   0x4   :  { %s2837_s27 = scalar_lea.hbm %s3531_s5, 3072 }
   0x5   :  { %p2838_p0 = scmp.ne.s32.totalorder %s3531_s5, %s2837_s27  ;;  %p2841_p1 = scmp.lt.u32.totalorder %s2837_s27, %s3531_s5 }
   0x7   :  { %p2843_p2 = pnand %p2841_p1, %p2838_p0 }
   0x9   :  { %2846 = shalt.err (!%p2843_p2)
}
   0xa   :  { %s2847_s14 = scalar_lea.vmem %s46_s22, 3072  ;;  %p2852_p4 = scmp.lt.s32.totalorder %s46_s22, %s46_s22 }
   0xb   :  { %p2848_p3 = scmp.ne.s32.totalorder %s46_s22, %s2847_s14  ;;  %p2853_p5 = scmp.lt.s32.totalorder %s2847_s14, %s2847_s14 }
   0xd   :  { %p2854_p6 = por %p2853_p5, %p2852_p4 }
   0xf   :  { %p2855_p7 = pnand %p2854_p6, %p2848_p3 }
  0x11   :  { %2858 = shalt.err (!%p2855_p7)
}
  0x12   :  { %s2933_s15 = smov 64   ;;  %s2934_s16 = smov 4  }
  0x13   :  { %51 = dma.hbm_to_vmem [thread:$0]  %s3531_s5, 3072, %s46_s22, [#allocation6], %s2933_s15, %s2933_s15, %s2934_s16  }
  0x14   :  { %s2859_s21 = scalar_lea.hbm %s3528_s2, 5120 }
  0x15   :  { %p2860_p8 = scmp.ne.s32.totalorder %s3528_s2, %s2859_s21  ;;  %p2863_p9 = scmp.lt.u32.totalorder %s2859_s21, %s3528_s2 }
  0x17   :  { %p2865_p10 = pnand %p2863_p9, %p2860_p8 }
  0x19   :  { %2868 = shalt.err (!%p2865_p10)
}
  0x1a   :  { %s2869_s28 = scalar_lea.vmem %s3005_s24, 5120  ;;  %p2874_p12 = scmp.lt.s32.totalorder %s3005_s24, %s3005_s24 }
  0x1b   :  { %p2870_p11 = scmp.ne.s32.totalorder %s3005_s24, %s2869_s28  ;;  %p2875_p13 = scmp.lt.s32.totalorder %s2869_s28, %s2869_s28 }
  0x1d   :  { %p2876_p0 = por %p2875_p13, %p2874_p12 }
  0x1f   :  { %p2877_p1 = pnand %p2876_p0, %p2870_p11 }
  0x21   :  { %2880 = shalt.err (!%p2877_p1)
}
  0x22   :  { %35 = dma.hbm_to_vmem [thread:$0]  %s3528_s2, 5120, %s3005_s24, [#allocation3], %s2933_s15, %s2933_s15, %s2934_s16  }
  0x23   :  { %s2935_s29 = smov [#allocation7]   ;;  %s2881_s17 = scalar_lea.hbm %s3533_s7, 5120 }
  0x24   :  { %s59_s30 = sshll.u32 %s2935_s29, 4  ;;  %p2882_p2 = scmp.ne.s32.totalorder %s3533_s7, %s2881_s17  ;;  %s60_s30 = int_to_ptr.vmem [resolvable:$true] %s59_s30 }
  0x25   :  { %p2885_p3 = scmp.lt.u32.totalorder %s2881_s17, %s3533_s7 }
  0x27   :  { %p2887_p4 = pnand %p2885_p3, %p2882_p2 }
  0x29   :  { %2890 = shalt.err (!%p2887_p4)
}
  0x2a   :  { %s2891_s23 = scalar_lea.vmem %s60_s30, 5120  ;;  %p2896_p6 = scmp.lt.s32.totalorder %s60_s30, %s60_s30 }
  0x2b   :  { %p2892_p5 = scmp.ne.s32.totalorder %s60_s30, %s2891_s23  ;;  %p2897_p7 = scmp.lt.s32.totalorder %s2891_s23, %s2891_s23 }
  0x2d   :  { %p2898_p8 = por %p2897_p7, %p2896_p6 }
  0x2f   :  { %p2899_p9 = pnand %p2898_p8, %p2892_p5 }
  0x31   :  { %2902 = shalt.err (!%p2899_p9)
}
  0x32   :  { %65 = dma.hbm_to_vmem [thread:$0]  %s3533_s7, 5120, %s60_s30, [#allocation6], %s2933_s15, %s2933_s15, %s2934_s16  }
  0x33   :  { %2925 = dma.done.wait [#allocation3], 5120  }
  0x34   :  { %2926 = vsyncadd [#allocation3], 4294962176 }
  0x35   :  { %2927 = dma.done.wait [#allocation6], 8192  }
  0x36   :  { %2928 = vsyncadd [#allocation6], 4294959104  ;;  %v2936_v0 = vmov 0   ;;  %v3062_v1 = vld [vmem:[%s3527_s1] sm:$0xff]  ;;  %v3067_v2 = vld [vmem:[%s3527_s1 + $0x8] sm:$0xff]  ;;  %v112_v54 = vlaneseq }
  0x37   :  { %2644 = vset.pattern.permute.xlu1 %v2936_v0  ;;  %2643 = vset.pattern.permute.xlu0 %v2936_v0  ;;  %vm92_vm0 = vcmp.ge.s32.totalorder %v3062_v1, 1  ;;  %vm88_vm1 = vcmp.ge.s32.totalorder %v3062_v1, 2  ;;  %vm93_vm2 = vcmp.ge.s32.totalorder %v3067_v2, 1  ;;  %vm89_vm3 = vcmp.ge.s32.totalorder %v3067_v2, 2  ;;  %v2645_v3 = vld [vmem:[#allocation2 + $0x40] sm:$0xff]   ;;  %v3078_v6 = vld [vmem:[%s3527_s1 + $0x10] sm:$0xff] }
  0x38   :  { %v154_v4 = vsel %vm92_vm0, 1, %v2936_v0  ;;  %v119_v5 = vsel %vm88_vm1, 1, %v2936_v0  ;;  %v155_v7 = vsel %vm93_vm2, 1, %v2936_v0  ;;  %v120_v8 = vsel %vm89_vm3, 1, %v2936_v0  ;;  %v3085_v9 = vld [vmem:[%s3527_s1 + $0x18] sm:$0xff]  ;;  %2346 = vmatprep.subr.bf16.mxu0 %v2645_v3  ;;  %v2646_v10 = vld [vmem:[#allocation2] sm:$0xff]  }
  0x39   :  { %159 = vperm.xlu0 %2643, %v154_v4   ;;  %124 = vperm.xlu1 %2644, %v119_v5   ;;  %vm96_vm4 = vcmp.le.s32.totalorder %v3062_v1, 14  ;;  %vm97_vm5 = vcmp.le.s32.totalorder %v3067_v2, 14  ;;  %vm94_vm6 = vcmp.ge.s32.totalorder %v3078_v6, 1  ;;  %v2647_v11 = vld [vmem:[#allocation2 + $0x48] sm:$0xff]   ;;  %vm95_vm7 = vcmp.ge.s32.totalorder %v3085_v9, 1  ;;  %v2649_v17 = vld [vmem:[#allocation2 + $0xc0] sm:$0xff]  }
  0x3a   :  { %v191_v12 = vsel %vm96_vm4, 1, %v2936_v0  ;;  %v192_v13 = vsel %vm97_vm5, 1, %v2936_v0  ;;  %2347 = vmatpush3.bf16.msra.mxu0 %v2646_v10  ;;  %v156_v14 = vsel %vm94_vm6, 1, %v2936_v0  ;;  %v2648_v15 = vld [vmem:[#allocation2 + $0x8] sm:$0xff]   ;;  %v157_v16 = vsel %vm95_vm7, 1, %v2936_v0  ;;  %v2650_v18 = vld [vmem:[#allocation2 + $0x80] sm:$0xff]   ;;  %2374 = vmatprep.subr.bf16.mxu1 %v2649_v17 }
  0x3b   :  { %2348 = vmatprep.subr.bf16.mxu0 %v2647_v11  ;;  %vm90_vm8 = vcmp.ge.s32.totalorder %v3078_v6, 2  ;;  %vm91_vm9 = vcmp.ge.s32.totalorder %v3085_v9, 2  ;;  %v2651_v19 = vld [vmem:[#allocation2 + $0x50] sm:$0xff]   ;;  %vm98_vm10 = vcmp.le.s32.totalorder %v3078_v6, 14  ;;  %2375 = vmatpush3.bf16.msra.mxu1 %v2650_v18  ;;  %vm99_vm11 = vcmp.le.s32.totalorder %v3085_v9, 14  ;;  %v2653_v21 = vld [vmem:[#allocation2 + $0xc8] sm:$0xff]  }
  0x3c   :  { %v2652_v20 = vld [vmem:[#allocation2 + $0x10] sm:$0xff]   ;;  %v121_v22 = vsel %vm90_vm8, 1, %v2936_v0  ;;  %v2654_v23 = vld [vmem:[#allocation2 + $0x88] sm:$0xff]   ;;  %v122_v24 = vsel %vm91_vm9, 1, %v2936_v0  ;;  %2376 = vmatprep.subr.bf16.mxu1 %v2653_v21  ;;  %v2655_v25 = vld [vmem:[#allocation2 + $0x58] sm:$0xff]   ;;  %v193_v27 = vsel %vm98_vm10, 1, %v2936_v0 }
  0x3d   :  { %162 = vperm.xlu0 %2643, %v155_v7   ;;  %127 = vperm.xlu1 %2644, %v120_v8   ;;  %v2656_v26 = vld [vmem:[#allocation2 + $0x18] sm:$0xff]   ;;  %v2657_v28 = vld [vmem:[#allocation2 + $0xd0] sm:$0xff]   ;;  %v194_v29 = vsel %vm99_vm11, 1, %v2936_v0  ;;  %vm100_vm12 = vcmp.le.s32.totalorder %v3062_v1, 13  ;;  %v2659_v31 = vld [vmem:[#allocation2 + $0x60] sm:$0xff]   ;;  %vm101_vm13 = vcmp.le.s32.totalorder %v3067_v2, 13 }
  0x3e   :  { %2349 = vmatpush3.bf16.msra.mxu0 %v2648_v15  ;;  %v2658_v30 = vld [vmem:[#allocation2 + $0x90] sm:$0xff]   ;;  %v2660_v32 = vld [vmem:[#allocation2 + $0x20] sm:$0xff]   ;;  %vm102_vm14 = vcmp.le.s32.totalorder %v3078_v6, 13  ;;  %v2661_v33 = vld [vmem:[#allocation2 + $0xd8] sm:$0xff]   ;;  %v226_v34 = vsel %vm100_vm12, 1, %v2936_v0  ;;  %v227_v36 = vsel %vm101_vm13, 1, %v2936_v0 }
  0x3f   :  { %2350 = vmatprep.subr.bf16.mxu0 %v2651_v19  ;;  %2377 = vmatpush3.bf16.msra.mxu1 %v2654_v23  ;;  %v2662_v35 = vld [vmem:[#allocation2 + $0x98] sm:$0xff]   ;;  %v2663_v37 = vld [vmem:[#allocation2 + $0x68] sm:$0xff]   ;;  %vm103_vm15 = vcmp.le.s32.totalorder %v3085_v9, 13  ;;  %v2665_v39 = vld [vmem:[#allocation2 + $0xe0] sm:$0xff]   ;;  %v228_v40 = vsel %vm102_vm14, 1, %v2936_v0  ;;  %v3127_v57 = vshrl.u32 %v112_v54, 7 }
  0x40   :  { %2378 = vmatprep.subr.bf16.mxu1 %v2657_v28  ;;  %v2664_v38 = vld [vmem:[#allocation2 + $0x28] sm:$0xff]   ;;  %v2666_v41 = vld [vmem:[#allocation2 + $0xa0] sm:$0xff]   ;;  %v229_v42 = vsel %vm103_vm15, 1, %v2936_v0  ;;  %v2667_v43 = vld [vmem:[#allocation2 + $0x70] sm:$0xff]  }
  0x41   :  { %196 = vperm.xlu0 %2643, %v191_v12   ;;  %199 = vperm.xlu1 %2644, %v192_v13   ;;  %v2668_v44 = vld [vmem:[#allocation2 + $0x30] sm:$0xff]   ;;  %v2669_v45 = vld [vmem:[#allocation2 + $0xe8] sm:$0xff]   ;;  %v2671_v47 = vld [vmem:[#allocation2 + $0x78] sm:$0xff]   ;;  %vm149_vm0 = vcmp.lt.s32.totalorder %v3127_v57, 1  ;;  %vm114_vm1 = vcmp.lt.s32.totalorder %v3127_v57, 2  ;;  %vm186_vm2 = vcmp.lt.s32.totalorder %v3127_v57, 7 }
  0x42   :  { %2351 = vmatpush3.bf16.msra.mxu0 %v2652_v20  ;;  %v2670_v46 = vld [vmem:[#allocation2 + $0xa8] sm:$0xff]   ;;  %v2672_v48 = vld [vmem:[#allocation2 + $0x38] sm:$0xff]   ;;  %v2673_v49 = vld [vmem:[#allocation2 + $0xf0] sm:$0xff]  }
  0x43   :  { %2352 = vmatprep.subr.bf16.mxu0 %v2655_v25  ;;  %2379 = vmatpush3.bf16.msra.mxu1 %v2658_v30  ;;  %v2674_v50 = vld [vmem:[#allocation2 + $0xb0] sm:$0xff]   ;;  %v2675_v51 = vld [vmem:[#allocation2 + $0x100] sm:$0xff]   ;;  %v2676_v52 = vld [vmem:[#allocation2 + $0xf8] sm:$0xff]  }
  0x44   :  { %2380 = vmatprep.subr.bf16.mxu1 %v2661_v33  ;;  %v2677_v53 = vld [vmem:[#allocation2 + $0xb8] sm:$0xff]   ;;  %v3120_v55 = vld [vmem:[%s3526_s0] sm:$0xff]  ;;  %v3125_v56 = vld [vmem:[%s3526_s0 + $0x8] sm:$0xff] }
  0x45   :  { %165 = vperm.xlu0 %2643, %v156_v14   ;;  %168 = vperm.xlu1 %2644, %v157_v16   ;;  %v3132_v58 = vld [vmem:[%s3526_s0 + $0x18] sm:$0xff]  ;;  %v145_v59 = vrot.slane %v3120_v55, 7  ;;  %v146_v60 = vrot.slane %v3125_v56, 7  ;;  %v108_v62 = vrot.slane %v3120_v55, 6  ;;  %v109_v63 = vrot.slane %v3125_v56, 6  ;;  %v3144_v1 = vld [vmem:[%s3526_s0 + $0x10] sm:$0xff] }
  0x46   :  { %2353 = vmatpush3.bf16.msra.mxu0 %v2656_v26  ;;  %v148_v61 = vrot.slane %v3132_v58, 7  ;;  %v111_v0 = vrot.slane %v3132_v58, 6  ;;  %v182_v6 = vrot.slane %v3120_v55, 1  ;;  %v183_v7 = vrot.slane %v3125_v56, 1  ;;  %v2678_v19 = vld [vmem:[#allocation2 + $0x108] sm:$0xff]  }
  0x47   :  { %2354 = vmatprep.subr.bf16.mxu0 %v2659_v31  ;;  %2381 = vmatpush3.bf16.msra.mxu1 %v2662_v35  ;;  %v152_v2 = vsel %vm149_vm0, %v145_v59, %v146_v60  ;;  %v184_v8 = vrot.slane %v3144_v1, 1  ;;  %v117_v9 = vsel %vm114_vm1, %v108_v62, %v109_v63  ;;  %v147_v17 = vrot.slane %v3144_v1, 7 }
  0x48   :  { %2382 = vmatprep.subr.bf16.mxu1 %v2665_v39  ;;  %v153_v5 = vsel %vm149_vm0, %v148_v61, %v145_v59  ;;  %v118_v10 = vsel %vm114_vm1, %v111_v0, %v108_v62  ;;  %v189_v16 = vsel %vm186_vm2, %v182_v6, %v183_v7  ;;  %v185_v35 = vrot.slane %v3132_v58, 1  ;;  %v2683_v62 = vld [vmem:[#allocation2 + $0x130] sm:$0xff]  }
  0x49   :  { %130 = vperm.xlu0 %2643, %v121_v22   ;;  %133 = vperm.xlu1 %2644, %v122_v24   ;;  %v2174_v11 = vpack.c.bf16 %v152_v2, %v153_v5  ;;  %v2177_v14 = vpack.c.bf16 %v117_v9, %v118_v10  ;;  %v188_v15 = vsel %vm186_vm2, %v183_v7, %v184_v8  ;;  %v217_v39 = vrot.slane %v3120_v55, 2  ;;  %v2132_v10 = vld [vmem:[%s3529_s3] ss:$0 sm:$0xff] }
  0x4a   :  { %2355 = vmatpush3.bf16.msra.mxu0 %v2660_v32  ;;  %v2186_v21 = vpack.c.bf16 %v188_v15, %v189_v16  ;;  %v180_v24 = vpack.c.bf16 %v3125_v56, %v3120_v55  ;;  %v150_v25 = vsel %vm149_vm0, %v147_v17, %v148_v61  ;;  %v151_v26 = vsel %vm149_vm0, %v146_v60, %v147_v17  ;;  %v2682_v55 = vld [vmem:[#allocation2 + $0x128] sm:$0xff]  }
  0x4b   :  { %2356 = vmatprep.subr.bf16.mxu0 %v2663_v37  ;;  %2383 = vmatpush3.bf16.msra.mxu1 %v2666_v41  ;;  %v2180_v30 = vpack.c.bf16 %v150_v25, %v151_v26  ;;  %v2680_v37 = vld [vmem:[#allocation2 + $0x118] sm:$0xff]  }
  0x4c   :  { %2384 = vmatprep.subr.bf16.mxu1 %v2669_v45  ;;  %v219_v45 = vrot.slane %v3144_v1, 2 }
  0x4d   :  { %202 = vperm.xlu0 %2643, %v193_v27   ;;  %205 = vperm.xlu1 %2644, %v194_v29   ;;  %v110_v27 = vrot.slane %v3144_v1, 6  ;;  %v2679_v29 = vld [vmem:[#allocation2 + $0x110] sm:$0xff]  }
  0x4e   :  { %2357 = vmatpush3.bf16.msra.mxu0 %v2664_v38 }
  0x4f   :  { %2358 = vmatprep.subr.bf16.mxu0 %v2667_v43  ;;  %2385 = vmatpush3.bf16.msra.mxu1 %v2670_v46  ;;  %v115_v33 = vsel %vm114_vm1, %v110_v27, %v111_v0  ;;  %v190_v43 = vsel %vm186_vm2, %v185_v35, %v182_v6  ;;  %v2684_v0 = vld [vmem:[#allocation2 + $0x138] sm:$0xff]  }
  0x50   :  { %2386 = vmatprep.subr.bf16.mxu1 %v2673_v49 }
  0x51   :  { %231 = vperm.xlu0 %2643, %v226_v34   ;;  %234 = vperm.xlu1 %2644, %v227_v36   ;;  %v116_v34 = vsel %vm114_vm1, %v109_v63, %v110_v27  ;;  %v220_v63 = vrot.slane %v3132_v58, 2 }
  0x52   :  { %2359 = vmatpush3.bf16.msra.mxu0 %v2668_v44  ;;  %v2183_v38 = vpack.c.bf16 %v115_v33, %v116_v34  ;;  %v218_v44 = vrot.slane %v3125_v56, 2 }
  0x53   :  { %2360 = vmatprep.subr.bf16.mxu0 %v2671_v47  ;;  %2387 = vmatpush3.bf16.msra.mxu1 %v2674_v50  ;;  %v2681_v47 = vld [vmem:[#allocation2 + $0x120] sm:$0xff]  }
  0x54   :  { %2388 = vmatprep.subr.bf16.mxu1 %v2676_v52 }
  0x55   :  { %237 = vperm.xlu0 %2643, %v228_v40   ;;  %240 = vperm.xlu1 %2644, %v229_v42   ;;  %v187_v42 = vsel %vm186_vm2, %v184_v8, %v185_v35 }
  0x56   :  { %2361 = vmatpush3.bf16.msra.mxu0 %v2672_v48  ;;  %v2189_v48 = vpack.c.bf16 %v190_v43, %v187_v42 }
  0x57   :  { %2554 = vmatprep.subr.bf16.mxu0 %v2675_v51  ;;  %2389 = vmatpush3.bf16.msra.mxu1 %v2677_v53 }
  0xb8   :  { %v160_v3 = vpop.permute.xlu0 %159  ;;  %v125_v4 = vpop.permute.xlu1 %124 }
  0xb9   :  { %vm170_vm3 = vcmp.eq.s32.totalorder %v160_v3, 1  ;;  %vm135_vm6 = vcmp.eq.s32.totalorder %v125_v4, 1 }
  0xbc   :  { %v163_v12 = vpop.permute.xlu0 %162  ;;  %v128_v13 = vpop.permute.xlu1 %127 }
  0xbd   :  { %vm171_vm4 = vcmp.eq.s32.totalorder %v163_v12, 1  ;;  %vm136_vm5 = vcmp.eq.s32.totalorder %v128_v13, 1 }
  0xbe   :  { %vm3164_vm7 = vmpackc.low %vm171_vm4, %vm170_vm3  ;;  %vm221_vm4 = vcmp.lt.s32.totalorder %v3127_v57, 6 }
  0xbf   :  { %vm3168_vm8 = vmpackc.low %vm136_vm5, %vm135_vm6  ;;  %2175 = vmatprep.mubr.msk.bf16.mxu0 %vm3164_vm7, %v2174_v11  ;;  %v223_v52 = vsel %vm221_vm4, %v218_v44, %v219_v45  ;;  %v224_v53 = vsel %vm221_vm4, %v217_v39, %v218_v44  ;;  %v225_v2 = vsel %vm221_vm4, %v220_v63, %v217_v39 }
  0xc0   :  { %v197_v22 = vpop.permute.xlu0 %196  ;;  %2178 = vmatmul.mubr.msk.bf16.vlgmr.msra.gmra.mrb[0].mxu0 %vm3168_vm8, %v2177_v14  ;;  %v200_v23 = vpop.permute.xlu1 %199  ;;  %v2192_v56 = vpack.c.bf16 %v223_v52, %v224_v53 }
  0xc1   :  { %vm207_vm9 = vcmp.eq.s32.totalorder %v197_v22, 1  ;;  %2555 = vmatpush3.bf16.msra.mxu0 %v2675_v51  ;;  %vm208_vm10 = vcmp.eq.s32.totalorder %v200_v23, 1  ;;  %v181_v51 = vpack.c.bf16 %v3132_v58, %v3144_v1  ;;  %v222_v1 = vsel %vm221_vm4, %v219_v45, %v220_v63  ;;  %v2688_v63 = vld [vmem:[#allocation5 + $0x8] sm:$0xff]  }
  0xc2   :  { %vm3183_vm11 = vmpackc.low %vm208_vm10, %vm207_vm9  ;;  %2556 = vmatprep.subr.bf16.mxu0 %v2678_v19  ;;  %v2195_v5 = vpack.c.bf16 %v225_v2, %v222_v1  ;;  %v2690_v1 = vld [vmem:[#allocation5 + $0x50] sm:$0xff]  }
  0xc3   :  { %2187 = vmatprep.mubr.msk.bf16.mxu1 %vm3183_vm11, %v2186_v21  ;;  %v2691_v2 = vld [vmem:[#allocation5 + $0x10] sm:$0xff]  }
  0xc4   :  { %v166_v31 = vpop.permute.xlu0 %165  ;;  %661 = vmatmul.mubr.bf16.vlgmr.msra.gmra.mrb[0].mxu1 %v180_v24  ;;  %v169_v32 = vpop.permute.xlu1 %168 }
  0xc5   :  { %vm172_vm12 = vcmp.eq.s32.totalorder %v166_v31, 1  ;;  %2557 = vmatpush3.bf16.msra.mxu0 %v2678_v19  ;;  %vm173_vm13 = vcmp.eq.s32.totalorder %v169_v32, 1 }
  0xc6   :  { %vm3194_vm14 = vmpackc.low %vm173_vm13, %vm172_vm12  ;;  %2558 = vmatprep.subr.bf16.mxu0 %v2679_v29 }
  0xc7   :  { %2181 = vmatprep.mubr.msk.bf16.mxu0 %vm3194_vm14, %v2180_v30 }
  0xc8   :  { %v131_v40 = vpop.permute.xlu0 %130  ;;  %v134_v41 = vpop.permute.xlu1 %133 }
  0xc9   :  { %vm137_vm15 = vcmp.eq.s32.totalorder %v131_v40, 1  ;;  %2559 = vmatpush3.bf16.msra.mxu0 %v2679_v29  ;;  %vm138_vm3 = vcmp.eq.s32.totalorder %v134_v41, 1 }
  0xca   :  { %vm3208_vm5 = vmpackc.low %vm138_vm3, %vm137_vm15  ;;  %2560 = vmatprep.subr.bf16.mxu0 %v2680_v37 }
  0xcb   :  { %2184 = vmatmul.mubr.msk.bf16.gmra.mrb[4].mxu0 %vm3208_vm5, %v2183_v38 }
  0xcc   :  { %v203_v49 = vpop.permute.xlu0 %202  ;;  %v206_v50 = vpop.permute.xlu1 %205 }
  0xcd   :  { %vm209_vm6 = vcmp.eq.s32.totalorder %v203_v49, 1  ;;  %2561 = vmatpush3.bf16.msra.mxu0 %v2680_v37  ;;  %vm210_vm9 = vcmp.eq.s32.totalorder %v206_v50, 1 }
  0xce   :  { %vm3220_vm10 = vmpackc.low %vm210_vm9, %vm209_vm6  ;;  %2562 = vmatprep.subr.bf16.mxu0 %v2681_v47 }
  0xcf   :  { %2190 = vmatprep.mubr.msk.bf16.mxu1 %vm3220_vm10, %v2189_v48 }
  0xd0   :  { %v232_v59 = vpop.permute.xlu0 %231  ;;  %669 = vmatmul.mubr.bf16.gmra.mrb[4].mxu1 %v181_v51  ;;  %v235_v60 = vpop.permute.xlu1 %234 }
  0xd1   :  { %vm242_vm12 = vcmp.eq.s32.totalorder %v232_v59, 1  ;;  %2563 = vmatpush3.bf16.msra.mxu0 %v2681_v47  ;;  %vm243_vm13 = vcmp.eq.s32.totalorder %v235_v60, 1  ;;  %v2685_v59 = vld [vmem:[#allocation5 + $0x40] sm:$0xff]  }
  0xd2   :  { %vm3226_vm15 = vmpackc.low %vm243_vm13, %vm242_vm12  ;;  %2564 = vmatprep.subr.bf16.mxu0 %v2682_v55  ;;  %v2686_v60 = vld [vmem:[#allocation5] sm:$0xff]   ;;  %2412 = vmatprep.subr.bf16.mxu1 %v2685_v59 }
  0xd3   :  { %2570 = vmatprep.mubr.msk.bf16.mxu0 %vm3226_vm15, %v2192_v56  ;;  %2413 = vmatpush3.bf16.msra.mxu1 %v2686_v60 }
  0xd4   :  { %v238_v3 = vpop.permute.xlu0 %237  ;;  %v241_v4 = vpop.permute.xlu1 %240 }
  0xd5   :  { %2565 = vmatpush3.bf16.msra.mxu0 %v2682_v55  ;;  %vm244_vm3 = vcmp.eq.s32.totalorder %v238_v3, 1  ;;  %vm245_vm6 = vcmp.eq.s32.totalorder %v241_v4, 1  ;;  %v2692_v3 = vld [vmem:[#allocation5 + $0x88] sm:$0xff]   ;;  %v2693_v4 = vld [vmem:[#allocation5 + $0x58] sm:$0xff]  }
  0xd6   :  { %2566 = vmatprep.subr.bf16.mxu0 %v2683_v62  ;;  %vm3237_vm9 = vmpackc.low %vm245_vm6, %vm244_vm3 }
  0xd9   :  { %2567 = vmatpush3.bf16.msra.mxu0 %v2683_v62  ;;  %v2687_v62 = vld [vmem:[#allocation5 + $0x48] sm:$0xff]  }
  0xda   :  { %2568 = vmatprep.subr.bf16.mxu0 %v2684_v0  ;;  %2414 = vmatprep.subr.bf16.mxu1 %v2687_v62 }
  0xdb   :  { %2415 = vmatpush3.bf16.msra.mxu1 %v2688_v63 }
  0xdc   :  { %2416 = vmatprep.subr.bf16.mxu1 %v2690_v1 }
  0xdd   :  { %2569 = vmatpush3.bf16.msra.mxu0 %v2684_v0  ;;  %v2689_v0 = vld [vmem:[#allocation5 + $0x80] sm:$0xff]  }
  0xde   :  { %2574 = vmatprep.subr.bf16.mxu0 %v2689_v0 }
  0xdf   :  { %2417 = vmatpush3.bf16.msra.mxu1 %v2691_v2 }
  0xe0   :  { %2571 = vmatmul.mubr.msk.bf16.vlgmr.msra.gmra.mrb[8].mxu0 %vm3237_vm9, %v2195_v5  ;;  %v2694_v5 = vld [vmem:[#allocation5 + $0x18] sm:$0xff]   ;;  %2418 = vmatprep.subr.bf16.mxu1 %v2693_v4 }
  0xe1   :  { %2575 = vmatpush3.bf16.msra.mxu0 %v2689_v0 }
  0xe2   :  { %2576 = vmatprep.subr.bf16.mxu0 %v2692_v3 }
  0xe3   :  { %2419 = vmatpush3.bf16.msra.mxu1 %v2694_v5 }
  0xe5   :  { %2577 = vmatpush3.bf16.msra.mxu0 %v2692_v3 }
 0x193   :  { %v2362_v58 = vpop.f32.mrb[0].mxu0 }
 0x194   :  { %v2363_v7 = vpop.f32.mrb[1].mxu0 }
 0x195   :  { %v2364_v8 = vadd.f32 %v2363_v7, %v2362_v58  ;;  %v2365_v9 = vpop.f32.mrb[2].mxu0  ;;  %v2695_v58 = vld [vmem:[#allocation5 + $0x90] sm:$0xff]   ;;  %v2696_v7 = vld [vmem:[#allocation5 + $0x60] sm:$0xff]  }
 0x196   :  { %v2366_v11 = vpop.f32.mrb[3].mxu0  ;;  %2578 = vmatprep.subr.bf16.mxu0 %v2695_v58  ;;  %2420 = vmatprep.subr.bf16.mxu1 %v2696_v7 }
 0x197   :  { %v2367_v12 = vadd.f32 %v2366_v11, %v2365_v9  ;;  %v2390_v13 = vpop.f32.mrb[0].mxu1  ;;  %v614_v15 = vadd.f32 %v2364_v8, %v2132_v10  ;;  %2579 = vmatpush3.bf16.msra.mxu0 %v2695_v58  ;;  %v2697_v8 = vld [vmem:[#allocation5 + $0x20] sm:$0xff]   ;;  %v2698_v9 = vld [vmem:[#allocation5 + $0x98] sm:$0xff]   ;;  %v2700_v11 = vld [vmem:[#allocation5 + $0x28] sm:$0xff]  }
 0x198   :  { %v2391_v14 = vpop.f32.mrb[1].mxu1  ;;  %2421 = vmatpush3.bf16.msra.mxu1 %v2697_v8  ;;  %2580 = vmatprep.subr.bf16.mxu0 %v2698_v9 }
 0x199   :  { %v2392_v16 = vadd.f32 %v2391_v14, %v2390_v13  ;;  %v2393_v17 = vpop.f32.mrb[2].mxu1  ;;  %v617_v21 = vadd.f32 %v2367_v12, %v2132_v10  ;;  %v2701_v12 = vld [vmem:[#allocation5 + $0xa0] sm:$0xff]   ;;  %v2702_v13 = vld [vmem:[#allocation5 + $0x70] sm:$0xff]  }
 0x19a   :  { %v2394_v19 = vpop.f32.mrb[3].mxu1  ;;  %v2703_v14 = vld [vmem:[#allocation5 + $0x30] sm:$0xff]  }
 0x19b   :  { %v2395_v22 = vadd.f32 %v2394_v19, %v2393_v17  ;;  %v663_v23 = vadd.f32 %v2392_v16, %v614_v15  ;;  %2581 = vmatpush3.bf16.msra.mxu0 %v2698_v9  ;;  %v2704_v15 = vld [vmem:[#allocation5 + $0xa8] sm:$0xff]   ;;  %v2705_v16 = vld [vmem:[#allocation5 + $0x78] sm:$0xff]   ;;  %v2707_v19 = vld [vmem:[#allocation5 + $0xb0] sm:$0xff]  }
 0x19c   :  { %2582 = vmatprep.subr.bf16.mxu0 %v2701_v12  ;;  %v2706_v17 = vld [vmem:[#allocation5 + $0x38] sm:$0xff]  }
 0x19d   :  { %v666_v24 = vadd.f32 %v2395_v22, %v617_v21  ;;  %v2708_v21 = vld [vmem:[#allocation5 + $0xb8] sm:$0xff]  }
 0x19e   :  { %v2368_v25 = vpop.f32.mrb[4].mxu0 }
 0x19f   :  { %v2369_v26 = vpop.f32.mrb[5].mxu0  ;;  %2583 = vmatpush3.bf16.msra.mxu0 %v2701_v12 }
 0x1a0   :  { %v2370_v27 = vadd.f32 %v2369_v26, %v2368_v25  ;;  %v2371_v29 = vpop.f32.mrb[6].mxu0  ;;  %2584 = vmatprep.subr.bf16.mxu0 %v2704_v15 }
 0x1a1   :  { %v2372_v30 = vpop.f32.mrb[7].mxu0 }
 0x1a2   :  { %v2373_v31 = vadd.f32 %v2372_v30, %v2371_v29  ;;  %v622_v34 = vadd.f32 %v2370_v27, %v2132_v10 }
 0x1a3   :  { %v2396_v32 = vpop.f32.mrb[4].mxu1  ;;  %2585 = vmatpush3.bf16.msra.mxu0 %v2704_v15 }
 0x1a4   :  { %v2397_v33 = vpop.f32.mrb[5].mxu1  ;;  %v625_v39 = vadd.f32 %v2373_v31, %v2132_v10  ;;  %v2699_v10 = vld [vmem:[#allocation5 + $0x68] sm:$0xff]   ;;  %2586 = vmatprep.subr.bf16.mxu0 %v2707_v19 }
 0x1a5   :  { %v2398_v35 = vadd.f32 %v2397_v33, %v2396_v32  ;;  %v2399_v37 = vpop.f32.mrb[6].mxu1  ;;  %2422 = vmatprep.subr.bf16.mxu1 %v2699_v10 }
 0x1a6   :  { %v2400_v38 = vpop.f32.mrb[7].mxu1  ;;  %2423 = vmatpush3.bf16.msra.mxu1 %v2700_v11 }
 0x1a7   :  { %v2401_v40 = vadd.f32 %v2400_v38, %v2399_v37  ;;  %v671_v41 = vadd.f32 %v2398_v35, %v622_v34  ;;  %2424 = vmatprep.subr.bf16.mxu1 %v2702_v13  ;;  %2587 = vmatpush3.bf16.msra.mxu0 %v2707_v19  ;;  %v2197_v37 = vld [vmem:[%s3530_s4] ss:$0 sm:$0xff]  ;;  %s2937_s4 = smov [#allocation8]  }
 0x1a8   :  { %2588 = vmatprep.subr.bf16.mxu0 %v2708_v21  ;;  %s2119_s21 = sshll.u32 %s2937_s4, 4  ;;  %s2120_s21 = int_to_ptr.vmem [resolvable:$true] %s2119_s21 }
 0x1a9   :  { %v674_v42 = vadd.f32 %v2401_v40, %v625_v39  ;;  %p2908_p11 = scmp.lt.s32.totalorder %s2120_s21, %s2120_s21 }
 0x1aa   :  { %2425 = vmatpush3.bf16.msra.mxu1 %v2703_v14 }
 0x1ab   :  { %2426 = vmatprep.subr.bf16.mxu1 %v2705_v16  ;;  %2589 = vmatpush3.bf16.msra.mxu0 %v2708_v21 }
 0x1ae   :  { %2427 = vmatpush3.bf16.msra.mxu1 %v2706_v17 }
 0x1b3   :  { %v2572_v43 = vpop.f32.mrb[8].mxu0 }
 0x1b4   :  { %v3246_v44 = vadd.f32 %v2572_v43, %v671_v41  ;;  %v711_v45 = vpop.f32.mrb[9].mxu0 }
 0x1b5   :  { %v3248_v47 = vadd.f32 %v711_v45, %v663_v23  ;;  %v2573_v48 = vpop.f32.mrb[10].mxu0 }
 0x1b6   :  { %v3250_v49 = vadd.f32 %v2573_v48, %v674_v42  ;;  %v714_v50 = vpop.f32.mrb[11].mxu0  ;;  %v729_v56 = vmul.f32 %v3246_v44, %v3246_v44 }
 0x1b7   :  { %v3252_v51 = vadd.f32 %v714_v50, %v666_v24  ;;  %v727_v52 = vmul.f32 %v3248_v47, %v3248_v47 }
 0x1b8   :  { %v730_v55 = vmul.f32 %v3250_v49, %v3250_v49 }
 0x1b9   :  { %731 = vadd.xlane.f32.xlu0 %v727_v52  ;;  %v728_v53 = vmul.f32 %v3252_v51, %v3252_v51 }
 0x1bb   :  { %733 = vadd.xlane.f32.xlu1 %v728_v53 }
 0x1bd   :  { %737 = vadd.xlane.f32.xlu0 %v730_v55 }
 0x1c1   :  { %735 = vadd.xlane.f32.xlu0 %v729_v56 }
 0x246   :  { %v732_v22 = vpop.xlane.xlu0 %731 }
 0x247   :  { %v739_v23 = vmul.f32 0.125, %v732_v22 }
 0x248   :  { %v734_v24 = vpop.xlane.xlu1 %733 }
 0x249   :  { %v743_v25 = vadd.f32 1e-06, %v739_v23  ;;  %v740_v26 = vmul.f32 0.125, %v734_v24 }
 0x24a   :  { %v738_v27 = vpop.xlane.xlu0 %737 }
 0x24b   :  { %2773 = vrsqrt.f32 %v743_v25  ;;  %v744_v29 = vadd.f32 1e-06, %v740_v26  ;;  %v742_v30 = vmul.f32 0.125, %v738_v27 }
 0x24d   :  { %2775 = vrsqrt.f32 %v744_v29  ;;  %v746_v31 = vadd.f32 1e-06, %v742_v30 }
 0x24e   :  { %v736_v32 = vpop.xlane.xlu0 %735 }
 0x24f   :  { %2777 = vrsqrt.f32 %v746_v31  ;;  %v741_v33 = vmul.f32 0.125, %v736_v32 }
 0x251   :  { %v745_v34 = vadd.f32 1e-06, %v741_v33 }
 0x253   :  { %2779 = vrsqrt.f32 %v745_v34 }
 0x255   :  { %v2774_v35 = vpop.eup %2773 }
 0x256   :  { %v751_v38 = vmul.f32 %v2774_v35, %v3248_v47  ;;  %v2709_v35 = vld [vmem:[#allocation7 + $0x40] sm:$0xff]  }
 0x257   :  { %v2776_v39 = vpop.eup %2775  ;;  %2450 = vmatprep.subr.bf16.mxu1 %v2709_v35  ;;  %v2740_v35 = vld [vmem:[#allocation7 + $0xb8] sm:$0xff]  }
 0x258   :  { %v752_v40 = vmul.f32 %v2776_v39, %v3252_v51  ;;  %v761_v41 = vmul.f32 %v2197_v37, %v751_v38 }
 0x259   :  { %v2778_v42 = vpop.eup %2777 }
 0x25a   :  { %v754_v43 = vmul.f32 %v2778_v42, %v3250_v49  ;;  %v762_v45 = vmul.f32 %v2197_v37, %v752_v40  ;;  %v2198_v48 = vmul.f32 -1.442695, %v761_v41 }
 0x25c   :  { %v764_v50 = vmul.f32 %v2197_v37, %v754_v43  ;;  %2781 = vpow2.f32 %v2198_v48  ;;  %v2199_v52 = vmul.f32 -1.442695, %v762_v45 }
 0x25d   :  { %v2780_v53 = vpop.eup %2779 }
 0x25e   :  { %v2201_v55 = vmul.f32 -1.442695, %v764_v50  ;;  %2783 = vpow2.f32 %v2199_v52  ;;  %v753_v56 = vmul.f32 %v2780_v53, %v3246_v44 }
 0x260   :  { %2785 = vpow2.f32 %v2201_v55  ;;  %v763_v59 = vmul.f32 %v2197_v37, %v753_v56  ;;  %v2710_v37 = vld [vmem:[#allocation7 + $0xc0] sm:$0xff]  }
 0x261   :  { %2478 = vmatprep.subr.bf16.mxu0 %v2710_v37  ;;  %v3309_v37 = vld [vmem:[#allocation7 + $0x100] sm:$0xff]  }
 0x262   :  { %v2200_v47 = vmul.f32 -1.442695, %v763_v59 }
 0x264   :  { %2787 = vpow2.f32 %v2200_v47 }
 0x266   :  { %v2782_v60 = vpop.eup %2781 }
 0x267   :  { %v777_v51 = vadd.f32 1.0, %v2782_v60 }
 0x268   :  { %v2784_v62 = vpop.eup %2783 }
 0x269   :  { %v778_v63 = vadd.f32 1.0, %v2784_v62  ;;  %2789 = vrcp.f32 %v777_v51 }
 0x26a   :  { %v2786_v49 = vpop.eup %2785 }
 0x26b   :  { %v780_v0 = vadd.f32 1.0, %v2786_v49  ;;  %2791 = vrcp.f32 %v778_v63 }
 0x26d   :  { %2793 = vrcp.f32 %v780_v0 }
 0x26e   :  { %v2788_v1 = vpop.eup %2787 }
 0x26f   :  { %v779_v2 = vadd.f32 1.0, %v2788_v1 }
 0x271   :  { %2795 = vrcp.f32 %v779_v2 }
 0x273   :  { %v2790_v3 = vpop.eup %2789 }
 0x274   :  { %v789_v5 = vmul.f32 %v2790_v3, %v761_v41 }
 0x275   :  { %v2792_v4 = vpop.eup %2791 }
 0x276   :  { %v790_v44 = vmul.f32 %v2792_v4, %v762_v45  ;;  %v793_v11 = vrot.slane %v789_v5, 7  ;;  %v809_v22 = vrot.slane %v789_v5, 1  ;;  %v2711_v4 = vld [vmem:[#allocation7] sm:$0xff]  }
 0x277   :  { %v2794_v58 = vpop.eup %2793 }
 0x278   :  { %v792_v7 = vmul.f32 %v2794_v58, %v764_v50  ;;  %v794_v8 = vrot.slane %v790_v44, 7  ;;  %v807_v9 = vpack.c.bf16 %v790_v44, %v789_v5  ;;  %v810_v13 = vrot.slane %v790_v44, 1  ;;  %v2712_v5 = vld [vmem:[#allocation7 + $0x80] sm:$0xff]   ;;  %v2713_v44 = vld [vmem:[#allocation7 + $0x48] sm:$0xff]  }
 0x279   :  { %v2714_v58 = vld [vmem:[#allocation7 + $0xc8] sm:$0xff]  }
 0x27a   :  { %v796_v10 = vrot.slane %v792_v7, 7  ;;  %1047 = vmatprep.mubr.bf16.mxu1 %v807_v9  ;;  %v799_v14 = vsel %vm149_vm0, %v793_v11, %v794_v8  ;;  %v812_v17 = vrot.slane %v792_v7, 1  ;;  %v815_v26 = vsel %vm186_vm2, %v809_v22, %v810_v13  ;;  %v2717_v9 = vld [vmem:[#allocation7 + $0x50] sm:$0xff]  }
 0x27b   :  { %v2796_v12 = vpop.eup %2795 }
 0x27c   :  { %v800_v15 = vsel %vm149_vm0, %v796_v10, %v793_v11  ;;  %v791_v16 = vmul.f32 %v2796_v12, %v763_v59  ;;  %v816_v29 = vsel %vm186_vm2, %v812_v17, %v809_v22  ;;  %v2719_v11 = vld [vmem:[#allocation7 + $0x10] sm:$0xff]   ;;  %v2728_v22 = vld [vmem:[#allocation7 + $0xa0] sm:$0xff]  }
 0x27d   :  { %v2227_v19 = vpack.c.bf16 %v799_v14, %v800_v15  ;;  %v2720_v12 = vld [vmem:[#allocation7 + $0x90] sm:$0xff]   ;;  %v2722_v14 = vld [vmem:[#allocation7 + $0xd8] sm:$0xff]  }
 0x27e   :  { %v808_v21 = vpack.c.bf16 %v792_v7, %v791_v16  ;;  %v811_v23 = vrot.slane %v791_v16, 1  ;;  %v795_v24 = vrot.slane %v791_v16, 7  ;;  %v2715_v7 = vld [vmem:[#allocation7 + $0x8] sm:$0xff]   ;;  %v2723_v15 = vld [vmem:[#allocation7 + $0x18] sm:$0xff]  }
 0x27f   :  { %2228 = vmatmul.mubr.msk.bf16.vlgmr.msra.gmra.mrb[8].mxu1 %vm3164_vm7, %v2227_v19  ;;  %v2724_v16 = vld [vmem:[#allocation7 + $0x98] sm:$0xff]   ;;  %v2726_v19 = vld [vmem:[#allocation7 + $0xe0] sm:$0xff]  }
 0x280   :  { %1055 = vmatprep.mubr.bf16.mxu1 %v808_v21  ;;  %v814_v25 = vsel %vm186_vm2, %v810_v13, %v811_v23  ;;  %v813_v27 = vsel %vm186_vm2, %v811_v23, %v812_v17  ;;  %v797_v32 = vsel %vm149_vm0, %v795_v24, %v796_v10  ;;  %v798_v33 = vsel %vm149_vm0, %v794_v8, %v795_v24  ;;  %v2716_v8 = vld [vmem:[#allocation7 + $0x88] sm:$0xff]   ;;  %v2718_v10 = vld [vmem:[#allocation7 + $0xd0] sm:$0xff]   ;;  %v2721_v13 = vld [vmem:[#allocation7 + $0x58] sm:$0xff]  }
 0x281   :  { %v2233_v30 = vpack.c.bf16 %v814_v25, %v815_v26  ;;  %v2236_v31 = vpack.c.bf16 %v816_v29, %v813_v27  ;;  %v2230_v34 = vpack.c.bf16 %v797_v32, %v798_v33  ;;  %2451 = vmatpush3.bf16.msra.mxu1 %v2711_v4  ;;  %v2725_v17 = vld [vmem:[#allocation7 + $0x60] sm:$0xff]   ;;  %v2729_v23 = vld [vmem:[#allocation7 + $0x68] sm:$0xff]   ;;  %v2733_v27 = vld [vmem:[#allocation7 + $0x70] sm:$0xff]  }
 0x282   :  { %2452 = vmatprep.subr.bf16.mxu1 %v2713_v44  ;;  %v2727_v21 = vld [vmem:[#allocation7 + $0x20] sm:$0xff]   ;;  %v2730_v24 = vld [vmem:[#allocation7 + $0xe8] sm:$0xff]   ;;  %v2734_v29 = vld [vmem:[#allocation7 + $0xf0] sm:$0xff]  }
 0x283   :  { %2590 = vmatprep.mubr.msk.bf16.mxu0 %vm3183_vm11, %v2233_v30  ;;  %v2731_v25 = vld [vmem:[#allocation7 + $0x28] sm:$0xff]   ;;  %v2735_v30 = vld [vmem:[#allocation7 + $0x30] sm:$0xff]   ;;  %v2737_v32 = vld [vmem:[#allocation7 + $0x78] sm:$0xff]  }
 0x284   :  { %2591 = vmatmul.mubr.msk.bf16.vlgmr.msra.gmra.mrb[12].mxu0 %vm3220_vm10, %v2236_v31  ;;  %v2732_v26 = vld [vmem:[#allocation7 + $0xa8] sm:$0xff]   ;;  %v2736_v31 = vld [vmem:[#allocation7 + $0xb0] sm:$0xff]   ;;  %v2738_v33 = vld [vmem:[#allocation7 + $0xf8] sm:$0xff]  }
 0x285   :  { %2479 = vmatpush3.bf16.msra.mxu0 %v2712_v5  ;;  %2453 = vmatpush3.bf16.msra.mxu1 %v2715_v7 }
 0x286   :  { %2480 = vmatprep.subr.bf16.mxu0 %v2714_v58  ;;  %2454 = vmatprep.subr.bf16.mxu1 %v2717_v9 }
 0x287   :  { %2231 = vmatmul.mubr.msk.bf16.gmra.mrb[12].mxu1 %vm3194_vm14, %v2230_v34  ;;  %v2739_v34 = vld [vmem:[#allocation7 + $0x38] sm:$0xff]  }
 0x289   :  { %2481 = vmatpush3.bf16.msra.mxu0 %v2716_v8  ;;  %2455 = vmatpush3.bf16.msra.mxu1 %v2719_v11 }
 0x28a   :  { %2482 = vmatprep.subr.bf16.mxu0 %v2718_v10  ;;  %2456 = vmatprep.subr.bf16.mxu1 %v2721_v13 }
 0x28d   :  { %2483 = vmatpush3.bf16.msra.mxu0 %v2720_v12  ;;  %2457 = vmatpush3.bf16.msra.mxu1 %v2723_v15 }
 0x28e   :  { %2484 = vmatprep.subr.bf16.mxu0 %v2722_v14  ;;  %2458 = vmatprep.subr.bf16.mxu1 %v2725_v17 }
 0x291   :  { %2485 = vmatpush3.bf16.msra.mxu0 %v2724_v16  ;;  %2459 = vmatpush3.bf16.msra.mxu1 %v2727_v21 }
 0x292   :  { %2486 = vmatprep.subr.bf16.mxu0 %v2726_v19  ;;  %2460 = vmatprep.subr.bf16.mxu1 %v2729_v23 }
 0x295   :  { %2487 = vmatpush3.bf16.msra.mxu0 %v2728_v22  ;;  %2461 = vmatpush3.bf16.msra.mxu1 %v2731_v25 }
 0x296   :  { %2488 = vmatprep.subr.bf16.mxu0 %v2730_v24  ;;  %2462 = vmatprep.subr.bf16.mxu1 %v2733_v27 }
 0x299   :  { %2489 = vmatpush3.bf16.msra.mxu0 %v2732_v26  ;;  %2463 = vmatpush3.bf16.msra.mxu1 %v2735_v30 }
 0x29a   :  { %2490 = vmatprep.subr.bf16.mxu0 %v2734_v29  ;;  %2464 = vmatprep.subr.bf16.mxu1 %v2737_v32 }
 0x29d   :  { %2491 = vmatpush3.bf16.msra.mxu0 %v2736_v31  ;;  %2465 = vmatpush3.bf16.msra.mxu1 %v2739_v34 }
 0x29e   :  { %2492 = vmatprep.subr.bf16.mxu0 %v2738_v33  ;;  %2594 = vmatprep.subr.bf16.mxu1 %v3309_v37  ;;  %v2742_v33 = vld [vmem:[#allocation7 + $0x108] sm:$0xff]  }
 0x2a1   :  { %2493 = vmatpush3.bf16.msra.mxu0 %v2740_v35 }
 0x352   :  { %v2428_v38 = vpop.f32.mrb[8].mxu1 }
 0x353   :  { %v2429_v39 = vpop.f32.mrb[9].mxu1 }
 0x354   :  { %v2430_v40 = vadd.f32 %v2429_v39, %v2428_v38  ;;  %v2431_v41 = vpop.f32.mrb[10].mxu1 }
 0x355   :  { %v2432_v42 = vpop.f32.mrb[11].mxu1 }
 0x356   :  { %v2433_v43 = vadd.f32 %v2432_v42, %v2431_v41 }
 0x357   :  { %v2592_v45 = vpop.f32.mrb[12].mxu0 }
 0x358   :  { %v1098_v48 = vpop.f32.mrb[13].mxu0 }
 0x359   :  { %v3293_v50 = vadd.f32 %v2430_v40, %v1098_v48  ;;  %v2593_v52 = vpop.f32.mrb[14].mxu0 }
 0x35a   :  { %v2434_v53 = vpop.f32.mrb[12].mxu1  ;;  %v1101_v55 = vpop.f32.mrb[15].mxu0 }
 0x35b   :  { %v3295_v56 = vadd.f32 %v2433_v43, %v1101_v55  ;;  %v2435_v59 = vpop.f32.mrb[13].mxu1  ;;  %v1114_v47 = vmul.f32 %v3293_v50, %v3293_v50 }
 0x35c   :  { %v2436_v60 = vadd.f32 %v2435_v59, %v2434_v53  ;;  %v2437_v51 = vpop.f32.mrb[14].mxu1 }
 0x35d   :  { %1118 = vadd.xlane.f32.xlu1 %v1114_v47  ;;  %v2438_v62 = vpop.f32.mrb[15].mxu1  ;;  %v1115_v63 = vmul.f32 %v3295_v56, %v3295_v56 }
 0x35e   :  { %v3301_v49 = vadd.f32 %v2592_v45, %v2436_v60  ;;  %v2439_v0 = vadd.f32 %v2438_v62, %v2437_v51  ;;  %v2238_v62 = vld [vmem:[%s3532_s6] ss:$0 sm:$0xff]  ;;  %s2903_s6 = scalar_lea.vmem %s2120_s21, 512 }
 0x35f   :  { %1120 = vadd.xlane.f32.xlu0 %v1115_v63  ;;  %p2904_p10 = scmp.ne.s32.totalorder %s2120_s21, %s2903_s6  ;;  %p2909_p12 = scmp.lt.s32.totalorder %s2903_s6, %s2903_s6 }
 0x360   :  { %v3303_v1 = vadd.f32 %v2593_v52, %v2439_v0  ;;  %v1116_v2 = vmul.f32 %v3301_v49, %v3301_v49 }
 0x361   :  { %p2910_p13 = por %p2909_p12, %p2908_p11 }
 0x362   :  { %v1117_v3 = vmul.f32 %v3303_v1, %v3303_v1 }
 0x363   :  { %1122 = vadd.xlane.f32.xlu0 %v1116_v2  ;;  %p2911_p0 = pnand %p2910_p13, %p2904_p10 }
 0x364   :  { %1124 = vadd.xlane.f32.xlu1 %v1117_v3 }
 0x3ea   :  { %v1119_v38 = vpop.xlane.xlu1 %1118 }
 0x3eb   :  { %v1126_v39 = vmul.f32 0.125, %v1119_v38 }
 0x3ec   :  { %v1121_v40 = vpop.xlane.xlu0 %1120 }
 0x3ed   :  { %v1130_v41 = vadd.f32 1e-06, %v1126_v39  ;;  %v1127_v42 = vmul.f32 0.125, %v1121_v40  ;;  %v2743_v39 = vld [vmem:[#allocation7 + $0x110] sm:$0xff]  }
 0x3ef   :  { %2797 = vrsqrt.f32 %v1130_v41  ;;  %v1131_v43 = vadd.f32 1e-06, %v1127_v42 }
 0x3f0   :  { %v1123_v45 = vpop.xlane.xlu0 %1122 }
 0x3f1   :  { %2799 = vrsqrt.f32 %v1131_v43  ;;  %v1128_v48 = vmul.f32 0.125, %v1123_v45  ;;  %v1125_v52 = vpop.xlane.xlu1 %1124 }
 0x3f2   :  { %v1129_v53 = vmul.f32 0.125, %v1125_v52  ;;  %v2744_v52 = vld [vmem:[#allocation7 + $0x118] sm:$0xff]  }
 0x3f3   :  { %v1132_v55 = vadd.f32 1e-06, %v1128_v48 }
 0x3f4   :  { %v1133_v59 = vadd.f32 1e-06, %v1129_v53 }
 0x3f5   :  { %2801 = vrsqrt.f32 %v1132_v55  ;;  %v2745_v55 = vld [vmem:[#allocation7 + $0x120] sm:$0xff]  }
 0x3f6   :  { %2803 = vrsqrt.f32 %v1133_v59  ;;  %v2746_v59 = vld [vmem:[#allocation7 + $0x128] sm:$0xff]  }
 0x3f9   :  { %v2798_v47 = vpop.eup %2797 }
 0x3fa   :  { %v1138_v51 = vmul.f32 %v2798_v47, %v3293_v50  ;;  %v2747_v47 = vld [vmem:[#allocation7 + $0x130] sm:$0xff]  }
 0x3fb   :  { %v2800_v60 = vpop.eup %2799 }
 0x3fc   :  { %v1139_v63 = vmul.f32 %v2800_v60, %v3295_v56  ;;  %v3317_v3 = vmul.f32 %v2238_v62, %v1138_v51  ;;  %v2748_v60 = vld [vmem:[#allocation7 + $0x138] sm:$0xff]  }
 0x3fe   :  { %v1149_v0 = vmul.f32 %v2238_v62, %v1139_v63  ;;  %v1182_v10 = vrot.slane %v3317_v3, 1  ;;  %v1166_v56 = vrot.slane %v3317_v3, 7  ;;  %v1152_v13 = vrot.slane %v3317_v3, 6 }
 0x3ff   :  { %v2802_v2 = vpop.eup %2801  ;;  %v1196_v42 = vrot.slane %v3317_v3, 2 }
 0x400   :  { %v2804_v4 = vpop.eup %2803  ;;  %v1140_v5 = vmul.f32 %v2802_v2, %v3301_v49  ;;  %v1183_v58 = vrot.slane %v1149_v0, 1  ;;  %v1167_v8 = vrot.slane %v1149_v0, 7  ;;  %v1153_v50 = vrot.slane %v1149_v0, 6 }
 0x401   :  { %v1141_v44 = vmul.f32 %v2804_v4, %v3303_v1  ;;  %v1180_v12 = vpack.c.bf16 %v1149_v0, %v3317_v3  ;;  %v1197_v40 = vrot.slane %v1149_v0, 2  ;;  %v2239_v4 = vld [vmem:[%s3534_s8] ss:$0 sm:$0xff] }
 0x402   :  { %v3321_v7 = vmul.f32 %v2238_v62, %v1140_v5  ;;  %v1188_v1 = vsel %vm186_vm2, %v1182_v10, %v1183_v58  ;;  %v1172_v19 = vsel %vm149_vm0, %v1166_v56, %v1167_v8  ;;  %v1158_v21 = vsel %vm114_vm1, %v1152_v13, %v1153_v50 }
 0x403   :  { %v3323_v9 = vmul.f32 %v2238_v62, %v1141_v44  ;;  %v1202_v48 = vsel %vm221_vm4, %v1196_v42, %v1197_v40 }
 0x404   :  { %v1184_v11 = vrot.slane %v3321_v7, 1  ;;  %v1168_v49 = vrot.slane %v3321_v7, 7  ;;  %v1154_v35 = vrot.slane %v3321_v7, 6  ;;  %v1198_v38 = vrot.slane %v3321_v7, 2 }
 0x405   :  { %v1169_v14 = vrot.slane %v3323_v9, 7  ;;  %v1155_v15 = vrot.slane %v3323_v9, 6  ;;  %v1185_v16 = vrot.slane %v3323_v9, 1  ;;  %v1199_v51 = vrot.slane %v3323_v9, 2 }
 0x406   :  { %v1187_v17 = vsel %vm186_vm2, %v1183_v58, %v1184_v11  ;;  %v1171_v22 = vsel %vm149_vm0, %v1167_v8, %v1168_v49  ;;  %v1157_v20 = vsel %vm114_vm1, %v1153_v50, %v1154_v35  ;;  %v1201_v43 = vsel %vm221_vm4, %v1197_v40, %v1198_v38 }
 0x407   :  { %v2293_v23 = vpack.c.bf16 %v1187_v17, %v1188_v1  ;;  %v1173_v24 = vsel %vm149_vm0, %v1169_v14, %v1166_v56  ;;  %v1159_v25 = vsel %vm114_vm1, %v1155_v15, %v1152_v13  ;;  %v1186_v26 = vsel %vm186_vm2, %v1184_v11, %v1185_v16 }
 0x408   :  { %v2281_v27 = vpack.c.bf16 %v1172_v19, %v1173_v24  ;;  %v2284_v29 = vpack.c.bf16 %v1158_v21, %v1159_v25  ;;  %v1189_v30 = vsel %vm186_vm2, %v1185_v16, %v1182_v10  ;;  %v1170_v31 = vsel %vm149_vm0, %v1168_v49, %v1169_v14 }
 0x409   :  { %2294 = vmatprep.mubr.msk.bf16.mxu0 %vm3183_vm11, %v2293_v23  ;;  %v2296_v32 = vpack.c.bf16 %v1189_v30, %v1186_v26  ;;  %v2287_v34 = vpack.c.bf16 %v1170_v31, %v1171_v22  ;;  %v1156_v41 = vsel %vm114_vm1, %v1154_v35, %v1155_v15  ;;  %v2299_v53 = vpack.c.bf16 %v1201_v43, %v1202_v48  ;;  %v2749_v43 = vld [vmem:[%s3536_s10 + $0x40] sm:$0xff]   ;;  %v2752_v48 = vld [vmem:[%s3536_s10 + $0x48] sm:$0xff]  }
 0x40a   :  { %2282 = vmatprep.mubr.msk.bf16.mxu1 %vm3164_vm7, %v2281_v27  ;;  %1619 = vmatmul.mubr.bf16.vlgmr.msra.gmra.mrb[16].mxu0 %v1180_v12  ;;  %v2290_v45 = vpack.c.bf16 %v1156_v41, %v1157_v20  ;;  %v1200_v46 = vsel %vm221_vm4, %v1198_v38, %v1199_v51  ;;  %v1203_v61 = vsel %vm221_vm4, %v1199_v51, %v1196_v42  ;;  %v2759_v51 = vld [vmem:[%s3536_s10 + $0x18] sm:$0xff]  }
 0x40b   :  { %2285 = vmatmul.mubr.msk.bf16.vlgmr.msra.gmra.mrb[16].mxu1 %vm3168_vm8, %v2284_v29  ;;  %2297 = vmatprep.mubr.msk.bf16.mxu0 %vm3220_vm10, %v2296_v32  ;;  %v2302_v62 = vpack.c.bf16 %v1203_v61, %v1200_v46  ;;  %v2760_v46 = vld [vmem:[%s3536_s10 + $0x98] sm:$0xff]   ;;  %v2761_v61 = vld [vmem:[%s3536_s10 + $0x60] sm:$0xff]  }
 0x40c   :  { %2595 = vmatpush3.bf16.msra.mxu1 %v3309_v37  ;;  %2288 = vmatprep.mubr.msk.bf16.mxu1 %vm3194_vm14, %v2287_v34  ;;  %v1181_v37 = vpack.c.bf16 %v3323_v9, %v3321_v7 }
 0x40d   :  { %2596 = vmatprep.subr.bf16.mxu1 %v2742_v33  ;;  %2516 = vmatprep.subr.bf16.mxu0 %v2749_v43 }
 0x410   :  { %2597 = vmatpush3.bf16.msra.mxu1 %v2742_v33 }
 0x411   :  { %2598 = vmatprep.subr.bf16.mxu1 %v2743_v39 }
 0x412   :  { %1627 = vmatmul.mubr.bf16.gmra.mrb[20].mxu0 %v1181_v37  ;;  %v2750_v37 = vld [vmem:[%s3536_s10] sm:$0xff]  }
 0x413   :  { %2291 = vmatmul.mubr.msk.bf16.gmra.mrb[20].mxu1 %vm3208_vm5, %v2290_v45  ;;  %2517 = vmatpush3.bf16.msra.mxu0 %v2750_v37  ;;  %v2751_v45 = vld [vmem:[%s3536_s10 + $0x80] sm:$0xff]  }
 0x414   :  { %2599 = vmatpush3.bf16.msra.mxu1 %v2743_v39  ;;  %2610 = vmatprep.mubr.msk.bf16.mxu1 %vm3226_vm15, %v2299_v53  ;;  %v2754_v53 = vld [vmem:[%s3536_s10 + $0x88] sm:$0xff]  }
 0x415   :  { %2600 = vmatprep.subr.bf16.mxu1 %v2744_v52  ;;  %2518 = vmatprep.subr.bf16.mxu0 %v2752_v48 }
 0x418   :  { %2601 = vmatpush3.bf16.msra.mxu1 %v2744_v52  ;;  %v2753_v52 = vld [vmem:[%s3536_s10 + $0x8] sm:$0xff]  }
 0x419   :  { %2602 = vmatprep.subr.bf16.mxu1 %v2745_v55  ;;  %2519 = vmatpush3.bf16.msra.mxu0 %v2753_v52 }
 0x41c   :  { %2603 = vmatpush3.bf16.msra.mxu1 %v2745_v55  ;;  %v2755_v55 = vld [vmem:[%s3536_s10 + $0x50] sm:$0xff]  }
 0x41d   :  { %2604 = vmatprep.subr.bf16.mxu1 %v2746_v59  ;;  %2520 = vmatprep.subr.bf16.mxu0 %v2755_v55 }
 0x420   :  { %2605 = vmatpush3.bf16.msra.mxu1 %v2746_v59  ;;  %v2756_v59 = vld [vmem:[%s3536_s10 + $0x10] sm:$0xff]  }
 0x421   :  { %2606 = vmatprep.subr.bf16.mxu1 %v2747_v47  ;;  %2521 = vmatpush3.bf16.msra.mxu0 %v2756_v59 }
 0x424   :  { %2607 = vmatpush3.bf16.msra.mxu1 %v2747_v47  ;;  %v2757_v47 = vld [vmem:[%s3536_s10 + $0x90] sm:$0xff]  }
 0x425   :  { %2608 = vmatprep.subr.bf16.mxu1 %v2748_v60 }
 0x428   :  { %2609 = vmatpush3.bf16.msra.mxu1 %v2748_v60  ;;  %v2758_v60 = vld [vmem:[%s3536_s10 + $0x58] sm:$0xff]  }
 0x429   :  { %2614 = vmatprep.subr.bf16.mxu1 %v2751_v45  ;;  %2522 = vmatprep.subr.bf16.mxu0 %v2758_v60 }
 0x42a   :  { %2523 = vmatpush3.bf16.msra.mxu0 %v2759_v51 }
 0x42b   :  { %2611 = vmatmul.mubr.msk.bf16.vlgmr.msra.gmra.mrb[24].mxu1 %vm3237_vm9, %v2302_v62  ;;  %v2762_v62 = vld [vmem:[%s3536_s10 + $0x20] sm:$0xff]   ;;  %2524 = vmatprep.subr.bf16.mxu0 %v2761_v61 }
 0x42c   :  { %2615 = vmatpush3.bf16.msra.mxu1 %v2751_v45 }
 0x42d   :  { %2616 = vmatprep.subr.bf16.mxu1 %v2754_v53 }
 0x42e   :  { %2525 = vmatpush3.bf16.msra.mxu0 %v2762_v62 }
 0x430   :  { %2617 = vmatpush3.bf16.msra.mxu1 %v2754_v53 }
 0x431   :  { %2618 = vmatprep.subr.bf16.mxu1 %v2757_v47 }
 0x434   :  { %2619 = vmatpush3.bf16.msra.mxu1 %v2757_v47 }
 0x435   :  { %2620 = vmatprep.subr.bf16.mxu1 %v2760_v46 }
 0x438   :  { %2621 = vmatpush3.bf16.msra.mxu1 %v2760_v46 }
 0x4dd   :  { %v2494_v63 = vpop.f32.mrb[16].mxu0 }
 0x4de   :  { %v2466_v0 = vpop.f32.mrb[16].mxu1  ;;  %v2495_v2 = vpop.f32.mrb[17].mxu0 }
 0x4df   :  { %v2496_v3 = vadd.f32 %v2495_v2, %v2494_v63  ;;  %v2467_v5 = vpop.f32.mrb[17].mxu1  ;;  %v2497_v44 = vpop.f32.mrb[18].mxu0  ;;  %v2763_v63 = vld [vmem:[%s3536_s10 + $0xa0] sm:$0xff]   ;;  %v2765_v2 = vld [vmem:[%s3536_s10 + $0x28] sm:$0xff]  }
 0x4e0   :  { %v2468_v58 = vadd.f32 %v2467_v5, %v2466_v0  ;;  %v2469_v7 = vpop.f32.mrb[18].mxu1  ;;  %v2498_v8 = vpop.f32.mrb[19].mxu0  ;;  %v2764_v0 = vld [vmem:[%s3536_s10 + $0x68] sm:$0xff]   ;;  %2622 = vmatprep.subr.bf16.mxu1 %v2763_v63  ;;  %v2768_v5 = vld [vmem:[%s3536_s10 + $0x30] sm:$0xff]  }
 0x4e1   :  { %v2499_v50 = vadd.f32 %v2498_v8, %v2497_v44  ;;  %v2470_v9 = vpop.f32.mrb[19].mxu1  ;;  %2526 = vmatprep.subr.bf16.mxu0 %v2764_v0  ;;  %2623 = vmatpush3.bf16.msra.mxu1 %v2763_v63  ;;  %v2769_v44 = vld [vmem:[%s3536_s10 + $0xb0] sm:$0xff]   ;;  %v2772_v8 = vld [vmem:[%s3536_s10 + $0xb8] sm:$0xff]  }
 0x4e2   :  { %v1572_v10 = vadd.f32 %v2468_v58, %v2239_v4  ;;  %v2471_v56 = vadd.f32 %v2470_v9, %v2469_v7  ;;  %2527 = vmatpush3.bf16.msra.mxu0 %v2765_v2  ;;  %v2770_v58 = vld [vmem:[%s3536_s10 + $0x78] sm:$0xff]  }
 0x4e3   :  { %v2771_v7 = vld [vmem:[%s3536_s10 + $0x38] sm:$0xff]  }
 0x4e4   :  { %v1575_v11 = vadd.f32 %v2471_v56, %v2239_v4  ;;  %v1621_v6 = vadd.f32 %v2496_v3, %v1572_v10  ;;  %v2766_v3 = vld [vmem:[%s3536_s10 + $0xa8] sm:$0xff]  }
 0x4e5   :  { %v2500_v12 = vpop.f32.mrb[20].mxu0  ;;  %2624 = vmatprep.subr.bf16.mxu1 %v2766_v3 }
 0x4e6   :  { %v2472_v13 = vpop.f32.mrb[20].mxu1  ;;  %v2501_v49 = vpop.f32.mrb[21].mxu0  ;;  %v1624_v1 = vadd.f32 %v2499_v50, %v1575_v11  ;;  %2625 = vmatpush3.bf16.msra.mxu1 %v2766_v3 }
 0x4e7   :  { %v2502_v14 = vadd.f32 %v2501_v49, %v2500_v12  ;;  %v2473_v15 = vpop.f32.mrb[21].mxu1  ;;  %v2503_v16 = vpop.f32.mrb[22].mxu0  ;;  %2626 = vmatprep.subr.bf16.mxu1 %v2769_v44 }
 0x4e8   :  { %v2474_v17 = vadd.f32 %v2473_v15, %v2472_v13  ;;  %v2475_v19 = vpop.f32.mrb[22].mxu1  ;;  %v2504_v21 = vpop.f32.mrb[23].mxu0 }
 0x4e9   :  { %v2505_v22 = vadd.f32 %v2504_v21, %v2503_v16  ;;  %v2476_v23 = vpop.f32.mrb[23].mxu1 }
 0x4ea   :  { %v1580_v24 = vadd.f32 %v2474_v17, %v2239_v4  ;;  %v2477_v25 = vadd.f32 %v2476_v23, %v2475_v19  ;;  %2627 = vmatpush3.bf16.msra.mxu1 %v2769_v44  ;;  %v2304_v17 = vld [vmem:[%s3535_s9] ss:$0 sm:$0xff] }
 0x4eb   :  { %2628 = vmatprep.subr.bf16.mxu1 %v2772_v8 }
 0x4ec   :  { %v1583_v26 = vadd.f32 %v2477_v25, %v2239_v4  ;;  %v1629_v27 = vadd.f32 %v2502_v14, %v1580_v24  ;;  %v2767_v4 = vld [vmem:[%s3536_s10 + $0x70] sm:$0xff]  }
 0x4ed   :  { %2528 = vmatprep.subr.bf16.mxu0 %v2767_v4 }
 0x4ee   :  { %v1632_v29 = vadd.f32 %v2505_v22, %v1583_v26  ;;  %2529 = vmatpush3.bf16.msra.mxu0 %v2768_v5  ;;  %2629 = vmatpush3.bf16.msra.mxu1 %v2772_v8 }
 0x4ef   :  { %2530 = vmatprep.subr.bf16.mxu0 %v2770_v58 }
 0x4f2   :  { %2531 = vmatpush3.bf16.msra.mxu0 %v2771_v7 }
 0x4fe   :  { %v2612_v30 = vpop.f32.mrb[24].mxu1 }
 0x4ff   :  { %v3392_v31 = vadd.f32 %v2612_v30, %v1629_v27  ;;  %v1669_v32 = vpop.f32.mrb[25].mxu1 }
 0x500   :  { %v3394_v33 = vadd.f32 %v1669_v32, %v1621_v6  ;;  %v2613_v34 = vpop.f32.mrb[26].mxu1 }
 0x501   :  { %v3396_v35 = vadd.f32 %v2613_v34, %v1632_v29  ;;  %v1672_v38 = vpop.f32.mrb[27].mxu1  ;;  %v1687_v42 = vmul.f32 %v3392_v31, %v3392_v31 }
 0x502   :  { %v3398_v39 = vadd.f32 %v1672_v38, %v1624_v1  ;;  %v1685_v40 = vmul.f32 %v3394_v33, %v3394_v33 }
 0x503   :  { %v1688_v20 = vmul.f32 %v3396_v35, %v3396_v35 }
 0x504   :  { %1689 = vadd.xlane.f32.xlu1 %v1685_v40  ;;  %v1686_v41 = vmul.f32 %v3398_v39, %v3398_v39 }
 0x506   :  { %1691 = vadd.xlane.f32.xlu0 %v1686_v41 }
 0x508   :  { %1695 = vadd.xlane.f32.xlu1 %v1688_v20 }
 0x50a   :  { %1693 = vadd.xlane.f32.xlu0 %v1687_v42 }
 0x591   :  { %v1690_v50 = vpop.xlane.xlu1 %1689 }
 0x592   :  { %v1697_v9 = vmul.f32 0.0625, %v1690_v50 }
 0x593   :  { %v1692_v10 = vpop.xlane.xlu0 %1691 }
 0x594   :  { %v1701_v56 = vadd.f32 1e-06, %v1697_v9  ;;  %v1698_v11 = vmul.f32 0.0625, %v1692_v10 }
 0x595   :  { %v1696_v6 = vpop.xlane.xlu1 %1695 }
 0x596   :  { %2805 = vrsqrt.f32 %v1701_v56  ;;  %v1702_v12 = vadd.f32 1e-06, %v1698_v11  ;;  %v1700_v13 = vmul.f32 0.0625, %v1696_v6 }
 0x597   :  { %v1694_v49 = vpop.xlane.xlu0 %1693 }
 0x598   :  { %2807 = vrsqrt.f32 %v1702_v12  ;;  %v1704_v1 = vadd.f32 1e-06, %v1700_v13  ;;  %v1699_v14 = vmul.f32 0.0625, %v1694_v49 }
 0x59a   :  { %2809 = vrsqrt.f32 %v1704_v1  ;;  %v1703_v15 = vadd.f32 1e-06, %v1699_v14 }
 0x59c   :  { %2811 = vrsqrt.f32 %v1703_v15 }
 0x5a0   :  { %v2806_v16 = vpop.eup %2805 }
 0x5a1   :  { %v1709_v19 = vmul.f32 %v2806_v16, %v3394_v33 }
 0x5a2   :  { %v2808_v21 = vpop.eup %2807 }
 0x5a3   :  { %v1710_v22 = vmul.f32 %v2808_v21, %v3398_v39  ;;  %v1719_v23 = vmul.f32 %v2304_v17, %v1709_v19 }
 0x5a4   :  { %v2810_v24 = vpop.eup %2809 }
 0x5a5   :  { %v1712_v25 = vmul.f32 %v2810_v24, %v3396_v35  ;;  %v1720_v26 = vmul.f32 %v2304_v17, %v1710_v22  ;;  %v2305_v27 = vmul.f32 -1.442695, %v1719_v23 }
 0x5a6   :  { %v2812_v29 = vpop.eup %2811 }
 0x5a7   :  { %v1722_v30 = vmul.f32 %v2304_v17, %v1712_v25  ;;  %2813 = vpow2.f32 %v2305_v27  ;;  %v2306_v32 = vmul.f32 -1.442695, %v1720_v26  ;;  %v1711_v34 = vmul.f32 %v2812_v29, %v3392_v31 }
 0x5a9   :  { %v2308_v38 = vmul.f32 -1.442695, %v1722_v30  ;;  %2815 = vpow2.f32 %v2306_v32  ;;  %v1721_v40 = vmul.f32 %v2304_v17, %v1711_v34 }
 0x5ab   :  { %2817 = vpow2.f32 %v2308_v38  ;;  %v2307_v33 = vmul.f32 -1.442695, %v1721_v40 }
 0x5ad   :  { %2819 = vpow2.f32 %v2307_v33 }
 0x5b1   :  { %v2814_v41 = vpop.eup %2813 }
 0x5b2   :  { %v1735_v39 = vadd.f32 1.0, %v2814_v41 }
 0x5b3   :  { %v2816_v20 = vpop.eup %2815 }
 0x5b4   :  { %v1736_v42 = vadd.f32 1.0, %v2816_v20  ;;  %2821 = vrcp.f32 %v1735_v39 }
 0x5b5   :  { %v2818_v35 = vpop.eup %2817 }
 0x5b6   :  { %v1738_v43 = vadd.f32 1.0, %v2818_v35  ;;  %2823 = vrcp.f32 %v1736_v42 }
 0x5b7   :  { %v2820_v37 = vpop.eup %2819 }
 0x5b8   :  { %2825 = vrcp.f32 %v1738_v43  ;;  %v1737_v45 = vadd.f32 1.0, %v2820_v37 }
 0x5ba   :  { %2827 = vrcp.f32 %v1737_v45 }
 0x5be   :  { %v2822_v48 = vpop.eup %2821 }
 0x5bf   :  { %v1747_v52 = vmul.f32 %v2822_v48, %v1719_v23 }
 0x5c0   :  { %v2824_v31 = vpop.eup %2823 }
 0x5c1   :  { %v1748_v53 = vmul.f32 %v2824_v31, %v1720_v26  ;;  %v1751_v62 = vrot.slane %v1747_v52, 7  ;;  %v1767_v0 = vrot.slane %v1747_v52, 1 }
 0x5c2   :  { %v2826_v55 = vpop.eup %2825 }
 0x5c3   :  { %v1750_v59 = vmul.f32 %v2826_v55, %v1722_v30  ;;  %v1752_v47 = vrot.slane %v1748_v53, 7  ;;  %v1765_v60 = vpack.c.bf16 %v1748_v53, %v1747_v52  ;;  %v1768_v46 = vrot.slane %v1748_v53, 1  ;;  %v2345_v53 = vld [vmem:[%s3537_s11] ss:$0 sm:$0xff] }
 0x5c4   :  { %v2828_v51 = vpop.eup %2827 }
 0x5c5   :  { %v1754_v61 = vrot.slane %v1750_v59, 7  ;;  %2005 = vmatprep.mubr.bf16.mxu0 %v1765_v60  ;;  %v1749_v63 = vmul.f32 %v2828_v51, %v1721_v40  ;;  %v1770_v2 = vrot.slane %v1750_v59, 1  ;;  %v1757_v3 = vsel %vm149_vm0, %v1751_v62, %v1752_v47 }
 0x5c6   :  { %v1773_v7 = vsel %vm186_vm2, %v1767_v0, %v1768_v46 }
 0x5c7   :  { %v1758_v4 = vsel %vm149_vm0, %v1754_v61, %v1751_v62  ;;  %v1769_v5 = vrot.slane %v1749_v63, 1  ;;  %v1766_v58 = vpack.c.bf16 %v1750_v59, %v1749_v63  ;;  %v1774_v9 = vsel %vm186_vm2, %v1770_v2, %v1767_v0 }
 0x5c8   :  { %v2334_v44 = vpack.c.bf16 %v1757_v3, %v1758_v4  ;;  %v1753_v10 = vrot.slane %v1749_v63, 7 }
 0x5c9   :  { %v1772_v8 = vsel %vm186_vm2, %v1768_v46, %v1769_v5  ;;  %v1771_v50 = vsel %vm186_vm2, %v1769_v5, %v1770_v2 }
 0x5ca   :  { %2335 = vmatmul.mubr.msk.bf16.vlgmr.msra.gmra.mrb[24].mxu0 %vm3164_vm7, %v2334_v44  ;;  %v2340_v56 = vpack.c.bf16 %v1772_v8, %v1773_v7  ;;  %v2343_v11 = vpack.c.bf16 %v1774_v9, %v1771_v50  ;;  %v1755_v6 = vsel %vm149_vm0, %v1753_v10, %v1754_v61  ;;  %v1756_v12 = vsel %vm149_vm0, %v1752_v47, %v1753_v10 }
 0x5cb   :  { %2013 = vmatprep.mubr.bf16.mxu0 %v1766_v58  ;;  %v2337_v13 = vpack.c.bf16 %v1755_v6, %v1756_v12 }
 0x5cc   :  { %2630 = vmatprep.mubr.msk.bf16.mxu1 %vm3183_vm11, %v2340_v56 }
 0x5cd   :  { %2631 = vmatmul.mubr.msk.bf16.vlgmr.msra.gmra.mrb[28].mxu1 %vm3220_vm10, %v2343_v11 }
 0x5d2   :  { %2338 = vmatmul.mubr.msk.bf16.gmra.mrb[28].mxu0 %vm3194_vm14, %v2337_v13 }
 0x69d   :  { %v2532_v18 = vpop.f32.mrb[24].mxu0 }
 0x69e   :  { %v2533_v49 = vpop.f32.mrb[25].mxu0 }
 0x69f   :  { %v2534_v1 = vadd.f32 %v2533_v49, %v2532_v18  ;;  %v2535_v14 = vpop.f32.mrb[26].mxu0 }
 0x6a0   :  { %v2536_v15 = vpop.f32.mrb[27].mxu0  ;;  %v2632_v28 = vpop.f32.mrb[28].mxu1 }
 0x6a1   :  { %v2537_v16 = vadd.f32 %v2536_v15, %v2535_v14  ;;  %v2056_v17 = vpop.f32.mrb[29].mxu1 }
 0x6a2   :  { %v2057_v54 = vadd.f32 %v2534_v1, %v2056_v17  ;;  %v2633_v19 = vpop.f32.mrb[30].mxu1 }
 0x6a3   :  { %v2059_v21 = vpop.f32.mrb[31].mxu1 }
 0x6a4   :  { %v2060_v22 = vadd.f32 %v2537_v16, %v2059_v21  ;;  %v2072_v23 = vmul.f32 %v2057_v54, %v2057_v54 }
 0x6a5   :  { %v2538_v24 = vpop.f32.mrb[28].mxu0 }
 0x6a6   :  { %2076 = vadd.xlane.f32.xlu1 %v2072_v23  ;;  %v2539_v57 = vpop.f32.mrb[29].mxu0  ;;  %v2073_v25 = vmul.f32 %v2060_v22, %v2060_v22 }
 0x6a7   :  { %v2540_v26 = vadd.f32 %v2539_v57, %v2538_v24  ;;  %v2541_v36 = vpop.f32.mrb[30].mxu0 }
 0x6a8   :  { %2078 = vadd.xlane.f32.xlu0 %v2073_v25  ;;  %v2542_v27 = vpop.f32.mrb[31].mxu0 }
 0x6a9   :  { %v2065_v29 = vadd.f32 %v2632_v28, %v2540_v26  ;;  %v2543_v30 = vadd.f32 %v2542_v27, %v2541_v36 }
 0x6ab   :  { %v2068_v32 = vadd.f32 %v2633_v19, %v2543_v30  ;;  %v2074_v34 = vmul.f32 %v2065_v29, %v2065_v29 }
 0x6ad   :  { %2080 = vadd.xlane.f32.xlu1 %v2074_v34  ;;  %v2075_v38 = vmul.f32 %v2068_v32, %v2068_v32 }
 0x6af   :  { %2082 = vadd.xlane.f32.xlu0 %v2075_v38 }
 0x733   :  { %v2077_v40 = vpop.xlane.xlu1 %2076 }
 0x734   :  { %v2084_v33 = vmul.f32 0.0625, %v2077_v40 }
 0x735   :  { %v2079_v41 = vpop.xlane.xlu0 %2078 }
 0x736   :  { %v2088_v39 = vadd.f32 1e-06, %v2084_v33  ;;  %v2085_v20 = vmul.f32 0.0625, %v2079_v41 }
 0x738   :  { %2829 = vrsqrt.f32 %v2088_v39  ;;  %v2089_v42 = vadd.f32 1e-06, %v2085_v20 }
 0x73a   :  { %2831 = vrsqrt.f32 %v2089_v42  ;;  %v2081_v35 = vpop.xlane.xlu1 %2080 }
 0x73b   :  { %v2086_v43 = vmul.f32 0.0625, %v2081_v35 }
 0x73c   :  { %v2083_v37 = vpop.xlane.xlu0 %2082 }
 0x73d   :  { %v2090_v45 = vadd.f32 1e-06, %v2086_v43  ;;  %v2087_v48 = vmul.f32 0.0625, %v2083_v37 }
 0x73f   :  { %2833 = vrsqrt.f32 %v2090_v45  ;;  %v2091_v31 = vadd.f32 1e-06, %v2087_v48 }
 0x741   :  { %2835 = vrsqrt.f32 %v2091_v31 }
 0x742   :  { %v2830_v52 = vpop.eup %2829 }
 0x743   :  { %v2096_v55 = vmul.f32 %v2830_v52, %v2057_v54 }
 0x744   :  { %v2832_v59 = vpop.eup %2831 }
 0x745   :  { %v2106_v47 = vmul.f32 %v2345_v53, %v2096_v55  ;;  %v2097_v60 = vmul.f32 %v2832_v59, %v2060_v22 }
 0x747   :  { %2110 = vst [vmem:[#allocation8] sm:$0xff] %v2106_v47  ;;  %v2107_v51 = vmul.f32 %v2345_v53, %v2097_v60 }
 0x749   :  { %v2834_v46 = vpop.eup %2833  ;;  %2111 = vst [vmem:[#allocation8 + $0x8] sm:$0xff] %v2107_v51 }
 0x74a   :  { %v2098_v61 = vmul.f32 %v2834_v46, %v2065_v29 }
 0x74b   :  { %v2836_v62 = vpop.eup %2835 }
 0x74c   :  { %v2108_v63 = vmul.f32 %v2345_v53, %v2098_v61  ;;  %v2099_v0 = vmul.f32 %v2836_v62, %v2068_v32 }
 0x74e   :  { %2112 = vst [vmem:[#allocation8 + $0x10] sm:$0xff] %v2108_v63  ;;  %v2109_v2 = vmul.f32 %v2345_v53, %v2099_v0 }
 0x750   :  { %2113 = vst [vmem:[#allocation8 + $0x18] sm:$0xff] %v2109_v2 }
 0x751   :  { %2914 = shalt.err (!%p2911_p0)
}
 0x752   :  { %s2915_s8 = scalar_lea.hbm %s3538_s12, 512 }
 0x753   :  { %p2916_p1 = scmp.ne.s32.totalorder %s3538_s12, %s2915_s8  ;;  %p2919_p2 = scmp.lt.u32.totalorder %s2915_s8, %s3538_s12 }
 0x755   :  { %p2921_p3 = pnand %p2919_p2, %p2916_p1 }
 0x757   :  { %2924 = shalt.err (!%p2921_p3)
}
 0x758   :  { %s2938_s27 = smov 128   ;;  %s2939_s28 = smov 8  }
 0x759   :  { %2125 = dma.vmem_to_hbm [thread:$0]  %s2120_s21, 512, %s3538_s12, [#allocation4], %s2938_s27, %s2938_s27, %s2939_s28  }
 0x75a   :  { %2929 = dma.done.wait [#allocation4], 512  }
 0x75b   :  { %2930 = vsyncadd [#allocation4], 4294966784 }
 0x75c   :  { %2129 = vsyncpa [#allocation3], 1 }
 0x75d   :  { %2130 = vsyncpa [#allocation6], 1 }
 0x75e   :  { %2131 = vsyncpa [#allocation4], 1 }

</bundles_post_ra>
